<compile_context>
chip_gen: v7x
topology: tpu7x:2x2x1
jax: 0.10.0
libtpu: 0.0.40
codegen_flags: <defaults>
</compile_context>

<pallas_src>
from functools import partial

import jax
import jax.numpy as jnp
from jax import lax
from jax.experimental import pallas as pl
from jax.experimental.pallas import tpu as pltpu


def decoder_kernel(x_ref, wih1_ref, whh1_ref, b1_ref,
                   w2_ref, b2_ref,
                   wout_ref, bout_ref,
                   out_ref,
                   h2all_sc, *, seq_len):
    B = x_ref.shape[0]
    H1 = whh1_ref.shape[0]
    H2 = b2_ref.shape[1] // 4

    # ---- Hoisted once: constant-x gate contribution (incl. b1), weights, and
    #      the b2 broadcast (JAX does not CSE broadcast_in_dim per iteration).
    xw1 = (jnp.dot(x_ref[...].astype(jnp.bfloat16), wih1_ref[...],
                   preferred_element_type=jnp.float32)
           + b1_ref[...])
    whh1 = whh1_ref[...]                                   # [H1, 4H1] bf16
    w2 = w2_ref[...]                                       # [H1+H2, 4H2] bf16 (fused)
    b2b = jnp.broadcast_to(b2_ref[...], (B, 4 * H2))       # [B, 4H2] f32

    h1 = jnp.zeros((B, H1), jnp.float32)
    c1 = jnp.zeros((B, H1), jnp.float32)
    h2 = jnp.zeros((B, H2), jnp.float32)
    c2 = jnp.zeros((B, H2), jnp.float32)

    # ---- Fully-unrolled time recurrence (seq_len is a static Python int). --
    # Gate columns were reordered host-side to (i, f, o, g): sigmoid covers the
    # first 3H columns, tanh only the candidate gate.
    for t in range(seq_len):
        # LSTM layer 1: only the recurrent matmul remains per step.
        g1 = xw1 + jnp.dot(h1.astype(jnp.bfloat16), whh1,
                           preferred_element_type=jnp.float32)
        s1 = jax.nn.sigmoid(g1[:, :3 * H1])
        gg1 = jnp.tanh(g1[:, 3 * H1:])
        i1 = s1[:, :H1]
        f1 = s1[:, H1:2 * H1]
        o1 = s1[:, 2 * H1:3 * H1]
        c1 = f1 * c1 + i1 * gg1
        h1 = o1 * jnp.tanh(c1)

        # LSTM layer 2: single fused [B, H1+H2] x [H1+H2, 4H2] MXU pass.
        h12 = jnp.concatenate([h1, h2], axis=1).astype(jnp.bfloat16)
        g2 = jnp.dot(h12, w2, preferred_element_type=jnp.float32) + b2b
        s2 = jax.nn.sigmoid(g2[:, :3 * H2])
        gg2 = jnp.tanh(g2[:, 3 * H2:])
        i2 = s2[:, :H2]
        f2 = s2[:, H2:2 * H2]
        o2 = s2[:, 2 * H2:3 * H2]
        c2 = f2 * c2 + i2 * gg2
        h2 = o2 * jnp.tanh(c2)

        # Stash this step's hidden state; output projection is batched below.
        h2all_sc[pl.ds(t * B, B), :] = h2

    # ---- Batched, lane-dense output projection: one matmul, one unmasked store.
    y = (jnp.dot(h2all_sc[...].astype(jnp.bfloat16), wout_ref[...],
                 preferred_element_type=jnp.float32)
         + bout_ref[...])
    out_ref[...] = y


def _reorder_gates(w, H):
    """PyTorch LSTM gate order (i, f, g, o) -> (i, f, o, g) along the 4H axis."""
    return jnp.concatenate(
        [w[:, :2 * H], w[:, 3 * H:4 * H], w[:, 2 * H:3 * H]], axis=1)


def decoder_forward(x, params, seq_len):
    """x: [batch, input_dim]; returns [seq_len, batch, n_features]."""
    (wih1, whh1, b1, wih2, whh2, b2, wout, bout) = params
    batch, input_dim = x.shape
    H1 = whh1.shape[0]
    H2 = whh2.shape[0]
    n_features = wout.shape[1]
    assert H1 == input_dim and H2 == 2 * input_dim

    # ---- Host-side weight prep (one-time, off the kernel's critical path). --
    wih1_r = _reorder_gates(wih1, H1).astype(jnp.bfloat16)
    whh1_r = _reorder_gates(whh1, H1).astype(jnp.bfloat16)
    b1_r = _reorder_gates(b1, H1)
    # Fuse layer-2 input + recurrent weights into one matmul operand.
    w2_r = _reorder_gates(jnp.concatenate([wih2, whh2], axis=0), H2).astype(jnp.bfloat16)
    b2_r = _reorder_gates(b2, H2)
    # Lane-dense output: pad n_features -> 128 lanes (sliced away below).
    NF_PAD = 128
    wout_p = jnp.pad(wout, ((0, 0), (0, NF_PAD - n_features))).astype(jnp.bfloat16)
    bout_p = jnp.pad(bout, ((0, 0), (0, NF_PAD - n_features)))

    # Pad batch to a full f32 sublane group; padded rows are sliced away below.
    B_pad = ((batch + 7) // 8) * 8
    x_pad = jnp.pad(x, ((0, B_pad - batch), (0, 0)))

    def full_spec(arr):
        nd = arr.ndim
        return pl.BlockSpec(arr.shape, lambda i, nd=nd: (0,) * nd)

    grid_spec = pltpu.PrefetchScalarGridSpec(
        num_scalar_prefetch=0,
        grid=(1,),  # time recurrence is unrolled inside the kernel body
        in_specs=[full_spec(x_pad),
                  full_spec(wih1_r), full_spec(whh1_r), full_spec(b1_r),
                  full_spec(w2_r), full_spec(b2_r),
                  full_spec(wout_p), full_spec(bout_p)],
        out_specs=pl.BlockSpec((seq_len * B_pad, NF_PAD), lambda i: (0, 0)),
        scratch_shapes=[pltpu.VMEM((seq_len * B_pad, H2), jnp.float32)],
    )

    out_flat = pl.pallas_call(
        partial(decoder_kernel, seq_len=seq_len),
        out_shape=jax.ShapeDtypeStruct((seq_len * B_pad, NF_PAD), jnp.float32),
        grid_spec=grid_spec,
        compiler_params=pltpu.CompilerParams(
            dimension_semantics=("arbitrary",)),
    )(x_pad, wih1_r, whh1_r, b1_r, w2_r, b2_r, wout_p, bout_p)

    out = out_flat.reshape(seq_len, B_pad, NF_PAD)
    return out[:, :batch, :n_features]


# -------------------------- pure-JAX reference ------------------------------
def lstm_ref(x_seq, wih, whh, b, matmul_dtype=jnp.float32):
    """x_seq: [T, B, in]; wih: [in, 4H]; whh: [H, 4H]; b: [1, 4H]."""
    H = whh.shape[0]
    wih_m = wih.astype(matmul_dtype)
    whh_m = whh.astype(matmul_dtype)

    def step(carry, xt):
        h, c = carry
        gates = (jnp.dot(xt.astype(matmul_dtype), wih_m,
                         preferred_element_type=jnp.float32)
                 + jnp.dot(h.astype(matmul_dtype), whh_m,
                           preferred_element_type=jnp.float32)
                 + b)
        i = jax.nn.sigmoid(gates[:, 0 * H:1 * H])
        f = jax.nn.sigmoid(gates[:, 1 * H:2 * H])
        g = jnp.tanh(gates[:, 2 * H:3 * H])
        o = jax.nn.sigmoid(gates[:, 3 * H:4 * H])
        c_new = f * c + i * g
        h_new = o * jnp.tanh(c_new)
        return (h_new, c_new), h_new

    B = x_seq.shape[1]
    init = (jnp.zeros((B, H), jnp.float32), jnp.zeros((B, H), jnp.float32))
    _, hs = lax.scan(step, init, x_seq)
    return hs


def decoder_ref(x, params, seq_len, matmul_dtype=jnp.float32):
    (wih1, whh1, b1, wih2, whh2, b2, wout, bout) = params
    x_seq = jnp.broadcast_to(x[None], (seq_len,) + x.shape)  # x.repeat(seq_len,1,1)
    h1 = lstm_ref(x_seq, wih1, whh1, b1, matmul_dtype)
    h2 = lstm_ref(h1, wih2, whh2, b2, matmul_dtype)
    return (jnp.dot(h2.astype(matmul_dtype), wout.astype(matmul_dtype),
                    preferred_element_type=jnp.float32) + bout)


# ------------------------------- main ----------------------------------------
if __name__ == "__main__":
    seq_len = 8
    batch = 2
    input_dim = 32           # latent dim fed to the decoder
    hidden_dim = 2 * input_dim
    n_features = 1

    key = jax.random.PRNGKey(0)
    ks = jax.random.split(key, 11)

    def uni(k, shape, fan):
        bound = 1.0 / jnp.sqrt(fan)
        return jax.random.uniform(k, shape, jnp.float32, -bound, bound)

    # LSTM 1: input_dim -> input_dim  (weights transposed: [in, 4H])
    wih1 = uni(ks[0], (input_dim, 4 * input_dim), input_dim)
    whh1 = uni(ks[1], (input_dim, 4 * input_dim), input_dim)
    b1 = (uni(ks[2], (1, 4 * input_dim), input_dim)
          + uni(ks[3], (1, 4 * input_dim), input_dim))  # bias_ih + bias_hh
    # LSTM 2: input_dim -> hidden_dim
    wih2 = uni(ks[4], (input_dim, 4 * hidden_dim), hidden_dim)
    whh2 = uni(ks[5], (hidden_dim, 4 * hidden_dim), hidden_dim)
    b2 = (uni(ks[6], (1, 4 * hidden_dim), hidden_dim)
          + uni(ks[7], (1, 4 * hidden_dim), hidden_dim))
    # Output linear: hidden_dim -> n_features
    wout = uni(ks[8], (hidden_dim, n_features), hidden_dim)
    bout = uni(ks[9], (1, n_features), hidden_dim)

    params = (wih1, whh1, b1, wih2, whh2, b2, wout, bout)

    x = jax.random.normal(ks[10], (batch, input_dim), jnp.float32)

    out = decoder_forward(x, params, seq_len)
    out = jax.block_until_ready(out)
    assert out.shape == (seq_len, batch, n_features)

    # Tight check vs a reference using the same bf16 matmul operands
    # (verifies kernel structure/gate math exactly).
    ref_bf16 = decoder_ref(x, params, seq_len, matmul_dtype=jnp.bfloat16)
    assert jnp.allclose(out, ref_bf16, atol=1e-3, rtol=1e-3), \
        "mismatch vs bf16-matmul reference"

    # Looser fidelity check vs the full-f32 reference (bf16 MXU operands
    # introduce ~1e-3..1e-2 level differences).
    ref_f32 = decoder_ref(x, params, seq_len)
    assert jnp.allclose(out, ref_f32, atol=5e-2, rtol=5e-2), \
        "mismatch vs f32 reference"

    print("KERNEL_OK")
</pallas_src>

<mosaic_0001>
module attributes {stable_mosaic.version = 11 : i64} {
  func.func @decoder_kernel(%arg0: i32, %arg1: memref<8x32xf32, #tpu.memory_space<vmem>>, %arg2: memref<32x128xbf16, #tpu.memory_space<vmem>>, %arg3: memref<32x128xbf16, #tpu.memory_space<vmem>>, %arg4: memref<1x128xf32, #tpu.memory_space<vmem>>, %arg5: memref<96x256xbf16, #tpu.memory_space<vmem>>, %arg6: memref<1x256xf32, #tpu.memory_space<vmem>>, %arg7: memref<64x128xbf16, #tpu.memory_space<vmem>>, %arg8: memref<1x128xf32, #tpu.memory_space<vmem>>, %arg9: memref<64x128xf32, #tpu.memory_space<vmem>>, %arg10: memref<64x64xf32, #tpu.memory_space<vmem>>) attributes {dimension_semantics = [#tpu.dimension_semantics<arbitrary>], iteration_bounds = array<i64: 1>, scalar_prefetch = 0 : i64, scratch_operands = 1 : i64, tpu.core_type = #tpu.core_type<tc>, window_params = [{pipeline_mode = #tpu.pipeline_mode<synchronous>, transform_indices = @transform_0, window_bounds = array<i64: 8, 32>}, {pipeline_mode = #tpu.pipeline_mode<synchronous>, transform_indices = @transform_1, window_bounds = array<i64: 32, 128>}, {pipeline_mode = #tpu.pipeline_mode<synchronous>, transform_indices = @transform_2, window_bounds = array<i64: 32, 128>}, {pipeline_mode = #tpu.pipeline_mode<synchronous>, transform_indices = @transform_3, window_bounds = array<i64: 1, 128>}, {pipeline_mode = #tpu.pipeline_mode<synchronous>, transform_indices = @transform_4, window_bounds = array<i64: 96, 256>}, {pipeline_mode = #tpu.pipeline_mode<synchronous>, transform_indices = @transform_5, window_bounds = array<i64: 1, 256>}, {pipeline_mode = #tpu.pipeline_mode<synchronous>, transform_indices = @transform_6, window_bounds = array<i64: 64, 128>}, {pipeline_mode = #tpu.pipeline_mode<synchronous>, transform_indices = @transform_7, window_bounds = array<i64: 1, 128>}, {pipeline_mode = #tpu.pipeline_mode<synchronous>, transform_indices = @transform_8, window_bounds = array<i64: 64, 128>}]} {
    %c0 = arith.constant 0 : index
    %c0_0 = arith.constant 0 : index
    %0 = vector.load %arg1[%c0, %c0_0] : memref<8x32xf32, #tpu.memory_space<vmem>>, vector<8x32xf32>
    %1 = arith.truncf %0 : vector<8x32xf32> to vector<8x32xbf16>
    %c0_1 = arith.constant 0 : index
    %c0_2 = arith.constant 0 : index
    %2 = vector.load %arg2[%c0_1, %c0_2] : memref<32x128xbf16, #tpu.memory_space<vmem>>, vector<32x128xbf16>
    %cst = arith.constant dense<0.000000e+00> : vector<8x128xf32>
    %3 = tpu.matmul %1, %2, %cst {dimension_numbers = #tpu.dot_dimension_numbers<[1], [0], [0], [1], [0, 0, 1, 1], [], []>} : vector<8x32xbf16>, vector<32x128xbf16>, vector<8x128xf32> -> vector<8x128xf32>
    %c0_3 = arith.constant 0 : index
    %c0_4 = arith.constant 0 : index
    %4 = vector.load %arg4[%c0_3, %c0_4] : memref<1x128xf32, #tpu.memory_space<vmem>>, vector<1x128xf32>
    %5 = vector.broadcast %4 : vector<1x128xf32> to vector<8x128xf32>
    %6 = arith.addf %3, %5 : vector<8x128xf32>
    %c0_5 = arith.constant 0 : index
    %c0_6 = arith.constant 0 : index
    %7 = vector.load %arg3[%c0_5, %c0_6] : memref<32x128xbf16, #tpu.memory_space<vmem>>, vector<32x128xbf16>
    %c0_7 = arith.constant 0 : index
    %c0_8 = arith.constant 0 : index
    %8 = vector.load %arg5[%c0_7, %c0_8] : memref<96x256xbf16, #tpu.memory_space<vmem>>, vector<96x256xbf16>
    %c0_9 = arith.constant 0 : index
    %c0_10 = arith.constant 0 : index
    %9 = vector.load %arg6[%c0_9, %c0_10] : memref<1x256xf32, #tpu.memory_space<vmem>>, vector<1x256xf32>
    %10 = vector.shape_cast %9 : vector<1x256xf32> to vector<1x256xf32>
    %11 = vector.broadcast %10 : vector<1x256xf32> to vector<8x256xf32>
    %cst_11 = arith.constant 0.000000e+00 : f32
    %12 = vector.broadcast %cst_11 : f32 to vector<8x32xf32>
    %cst_12 = arith.constant 0.000000e+00 : f32
    %13 = vector.broadcast %cst_12 : f32 to vector<8x32xf32>
    %cst_13 = arith.constant 0.000000e+00 : f32
    %14 = vector.broadcast %cst_13 : f32 to vector<8x64xf32>
    %cst_14 = arith.constant 0.000000e+00 : f32
    %15 = vector.broadcast %cst_14 : f32 to vector<8x64xf32>
    %16 = arith.truncf %12 : vector<8x32xf32> to vector<8x32xbf16>
    %cst_15 = arith.constant dense<0.000000e+00> : vector<8x128xf32>
    %17 = tpu.matmul %16, %7, %cst_15 {dimension_numbers = #tpu.dot_dimension_numbers<[1], [0], [0], [1], [0, 0, 1, 1], [], []>} : vector<8x32xbf16>, vector<32x128xbf16>, vector<8x128xf32> -> vector<8x128xf32>
    %18 = arith.addf %6, %17 : vector<8x128xf32>
    %19 = vector.extract_strided_slice %18 {offsets = [0, 0], sizes = [8, 96], strides = [1, 1]} : vector<8x128xf32> to vector<8x96xf32>
    %20 = arith.negf %19 : vector<8x96xf32>
    %21 = math.exp %20 : vector<8x96xf32>
    %cst_16 = arith.constant 1.000000e+00 : f32
    %22 = vector.broadcast %cst_16 : f32 to vector<8x96xf32>
    %23 = arith.addf %22, %21 : vector<8x96xf32>
    %24 = arith.divf %22, %23 : vector<8x96xf32>
    %25 = vector.extract_strided_slice %18 {offsets = [0, 96], sizes = [8, 32], strides = [1, 1]} : vector<8x128xf32> to vector<8x32xf32>
    %26 = math.tanh %25 : vector<8x32xf32>
    %27 = vector.extract_strided_slice %24 {offsets = [0, 0], sizes = [8, 32], strides = [1, 1]} : vector<8x96xf32> to vector<8x32xf32>
    %28 = vector.extract_strided_slice %24 {offsets = [0, 32], sizes = [8, 32], strides = [1, 1]} : vector<8x96xf32> to vector<8x32xf32>
    %29 = vector.extract_strided_slice %24 {offsets = [0, 64], sizes = [8, 32], strides = [1, 1]} : vector<8x96xf32> to vector<8x32xf32>
    %30 = arith.mulf %28, %13 : vector<8x32xf32>
    %31 = arith.mulf %27, %26 : vector<8x32xf32>
    %32 = arith.addf %30, %31 : vector<8x32xf32>
    %33 = math.tanh %32 : vector<8x32xf32>
    %34 = arith.mulf %29, %33 : vector<8x32xf32>
    %35 = tpu.concatenate %34, %14 in 1 : vector<8x32xf32>, vector<8x64xf32> -> vector<8x96xf32>
    %36 = arith.truncf %35 : vector<8x96xf32> to vector<8x96xbf16>
    %cst_17 = arith.constant dense<0.000000e+00> : vector<8x256xf32>
    %37 = tpu.matmul %36, %8, %cst_17 {dimension_numbers = #tpu.dot_dimension_numbers<[1], [0], [0], [1], [0, 0, 1, 1], [], []>} : vector<8x96xbf16>, vector<96x256xbf16>, vector<8x256xf32> -> vector<8x256xf32>
    %38 = arith.addf %37, %11 : vector<8x256xf32>
    %39 = vector.extract_strided_slice %38 {offsets = [0, 0], sizes = [8, 192], strides = [1, 1]} : vector<8x256xf32> to vector<8x192xf32>
    %40 = arith.negf %39 : vector<8x192xf32>
    %41 = math.exp %40 : vector<8x192xf32>
    %cst_18 = arith.constant 1.000000e+00 : f32
    %42 = vector.broadcast %cst_18 : f32 to vector<8x192xf32>
    %43 = arith.addf %42, %41 : vector<8x192xf32>
    %44 = arith.divf %42, %43 : vector<8x192xf32>
    %45 = vector.extract_strided_slice %38 {offsets = [0, 192], sizes = [8, 64], strides = [1, 1]} : vector<8x256xf32> to vector<8x64xf32>
    %46 = math.tanh %45 : vector<8x64xf32>
    %47 = vector.extract_strided_slice %44 {offsets = [0, 0], sizes = [8, 64], strides = [1, 1]} : vector<8x192xf32> to vector<8x64xf32>
    %48 = vector.extract_strided_slice %44 {offsets = [0, 64], sizes = [8, 64], strides = [1, 1]} : vector<8x192xf32> to vector<8x64xf32>
    %49 = vector.extract_strided_slice %44 {offsets = [0, 128], sizes = [8, 64], strides = [1, 1]} : vector<8x192xf32> to vector<8x64xf32>
    %50 = arith.mulf %48, %15 : vector<8x64xf32>
    %51 = arith.mulf %47, %46 : vector<8x64xf32>
    %52 = arith.addf %50, %51 : vector<8x64xf32>
    %53 = math.tanh %52 : vector<8x64xf32>
    %54 = arith.mulf %49, %53 : vector<8x64xf32>
    %c0_19 = arith.constant 0 : index
    %c0_20 = arith.constant 0 : index
    %55 = vector.load %arg10[%c0_19, %c0_20] : memref<64x64xf32, #tpu.memory_space<vmem>>, vector<8x64xf32>
    tpu.vector_store %arg10[%c0_19, %c0_20], %54 {strides = array<i32>} : memref<64x64xf32, #tpu.memory_space<vmem>>, vector<8x64xf32>,
    %56 = arith.truncf %34 : vector<8x32xf32> to vector<8x32xbf16>
    %cst_21 = arith.constant dense<0.000000e+00> : vector<8x128xf32>
    %57 = tpu.matmul %56, %7, %cst_21 {dimension_numbers = #tpu.dot_dimension_numbers<[1], [0], [0], [1], [0, 0, 1, 1], [], []>} : vector<8x32xbf16>, vector<32x128xbf16>, vector<8x128xf32> -> vector<8x128xf32>
    %58 = arith.addf %6, %57 : vector<8x128xf32>
    %59 = vector.extract_strided_slice %58 {offsets = [0, 0], sizes = [8, 96], strides = [1, 1]} : vector<8x128xf32> to vector<8x96xf32>
    %60 = arith.negf %59 : vector<8x96xf32>
    %61 = math.exp %60 : vector<8x96xf32>
    %cst_22 = arith.constant 1.000000e+00 : f32
    %62 = vector.broadcast %cst_22 : f32 to vector<8x96xf32>
    %63 = arith.addf %62, %61 : vector<8x96xf32>
    %64 = arith.divf %62, %63 : vector<8x96xf32>
    %65 = vector.extract_strided_slice %58 {offsets = [0, 96], sizes = [8, 32], strides = [1, 1]} : vector<8x128xf32> to vector<8x32xf32>
    %66 = math.tanh %65 : vector<8x32xf32>
    %67 = vector.extract_strided_slice %64 {offsets = [0, 0], sizes = [8, 32], strides = [1, 1]} : vector<8x96xf32> to vector<8x32xf32>
    %68 = vector.extract_strided_slice %64 {offsets = [0, 32], sizes = [8, 32], strides = [1, 1]} : vector<8x96xf32> to vector<8x32xf32>
    %69 = vector.extract_strided_slice %64 {offsets = [0, 64], sizes = [8, 32], strides = [1, 1]} : vector<8x96xf32> to vector<8x32xf32>
    %70 = arith.mulf %68, %32 : vector<8x32xf32>
    %71 = arith.mulf %67, %66 : vector<8x32xf32>
    %72 = arith.addf %70, %71 : vector<8x32xf32>
    %73 = math.tanh %72 : vector<8x32xf32>
    %74 = arith.mulf %69, %73 : vector<8x32xf32>
    %75 = tpu.concatenate %74, %54 in 1 : vector<8x32xf32>, vector<8x64xf32> -> vector<8x96xf32>
    %76 = arith.truncf %75 : vector<8x96xf32> to vector<8x96xbf16>
    %cst_23 = arith.constant dense<0.000000e+00> : vector<8x256xf32>
    %77 = tpu.matmul %76, %8, %cst_23 {dimension_numbers = #tpu.dot_dimension_numbers<[1], [0], [0], [1], [0, 0, 1, 1], [], []>} : vector<8x96xbf16>, vector<96x256xbf16>, vector<8x256xf32> -> vector<8x256xf32>
    %78 = arith.addf %77, %11 : vector<8x256xf32>
    %79 = vector.extract_strided_slice %78 {offsets = [0, 0], sizes = [8, 192], strides = [1, 1]} : vector<8x256xf32> to vector<8x192xf32>
    %80 = arith.negf %79 : vector<8x192xf32>
    %81 = math.exp %80 : vector<8x192xf32>
    %cst_24 = arith.constant 1.000000e+00 : f32
    %82 = vector.broadcast %cst_24 : f32 to vector<8x192xf32>
    %83 = arith.addf %82, %81 : vector<8x192xf32>
    %84 = arith.divf %82, %83 : vector<8x192xf32>
    %85 = vector.extract_strided_slice %78 {offsets = [0, 192], sizes = [8, 64], strides = [1, 1]} : vector<8x256xf32> to vector<8x64xf32>
    %86 = math.tanh %85 : vector<8x64xf32>
    %87 = vector.extract_strided_slice %84 {offsets = [0, 0], sizes = [8, 64], strides = [1, 1]} : vector<8x192xf32> to vector<8x64xf32>
    %88 = vector.extract_strided_slice %84 {offsets = [0, 64], sizes = [8, 64], strides = [1, 1]} : vector<8x192xf32> to vector<8x64xf32>
    %89 = vector.extract_strided_slice %84 {offsets = [0, 128], sizes = [8, 64], strides = [1, 1]} : vector<8x192xf32> to vector<8x64xf32>
    %90 = arith.mulf %88, %52 : vector<8x64xf32>
    %91 = arith.mulf %87, %86 : vector<8x64xf32>
    %92 = arith.addf %90, %91 : vector<8x64xf32>
    %93 = math.tanh %92 : vector<8x64xf32>
    %94 = arith.mulf %89, %93 : vector<8x64xf32>
    %c8 = arith.constant 8 : index
    %c0_25 = arith.constant 0 : index
    %95 = vector.load %arg10[%c8, %c0_25] : memref<64x64xf32, #tpu.memory_space<vmem>>, vector<8x64xf32>
    tpu.vector_store %arg10[%c8, %c0_25], %94 {strides = array<i32>} : memref<64x64xf32, #tpu.memory_space<vmem>>, vector<8x64xf32>,
    %96 = arith.truncf %74 : vector<8x32xf32> to vector<8x32xbf16>
    %cst_26 = arith.constant dense<0.000000e+00> : vector<8x128xf32>
    %97 = tpu.matmul %96, %7, %cst_26 {dimension_numbers = #tpu.dot_dimension_numbers<[1], [0], [0], [1], [0, 0, 1, 1], [], []>} : vector<8x32xbf16>, vector<32x128xbf16>, vector<8x128xf32> -> vector<8x128xf32>
    %98 = arith.addf %6, %97 : vector<8x128xf32>
    %99 = vector.extract_strided_slice %98 {offsets = [0, 0], sizes = [8, 96], strides = [1, 1]} : vector<8x128xf32> to vector<8x96xf32>
    %100 = arith.negf %99 : vector<8x96xf32>
    %101 = math.exp %100 : vector<8x96xf32>
    %cst_27 = arith.constant 1.000000e+00 : f32
    %102 = vector.broadcast %cst_27 : f32 to vector<8x96xf32>
    %103 = arith.addf %102, %101 : vector<8x96xf32>
    %104 = arith.divf %102, %103 : vector<8x96xf32>
    %105 = vector.extract_strided_slice %98 {offsets = [0, 96], sizes = [8, 32], strides = [1, 1]} : vector<8x128xf32> to vector<8x32xf32>
    %106 = math.tanh %105 : vector<8x32xf32>
    %107 = vector.extract_strided_slice %104 {offsets = [0, 0], sizes = [8, 32], strides = [1, 1]} : vector<8x96xf32> to vector<8x32xf32>
    %108 = vector.extract_strided_slice %104 {offsets = [0, 32], sizes = [8, 32], strides = [1, 1]} : vector<8x96xf32> to vector<8x32xf32>
    %109 = vector.extract_strided_slice %104 {offsets = [0, 64], sizes = [8, 32], strides = [1, 1]} : vector<8x96xf32> to vector<8x32xf32>
    %110 = arith.mulf %108, %72 : vector<8x32xf32>
    %111 = arith.mulf %107, %106 : vector<8x32xf32>
    %112 = arith.addf %110, %111 : vector<8x32xf32>
    %113 = math.tanh %112 : vector<8x32xf32>
    %114 = arith.mulf %109, %113 : vector<8x32xf32>
    %115 = tpu.concatenate %114, %94 in 1 : vector<8x32xf32>, vector<8x64xf32> -> vector<8x96xf32>
    %116 = arith.truncf %115 : vector<8x96xf32> to vector<8x96xbf16>
    %cst_28 = arith.constant dense<0.000000e+00> : vector<8x256xf32>
    %117 = tpu.matmul %116, %8, %cst_28 {dimension_numbers = #tpu.dot_dimension_numbers<[1], [0], [0], [1], [0, 0, 1, 1], [], []>} : vector<8x96xbf16>, vector<96x256xbf16>, vector<8x256xf32> -> vector<8x256xf32>
    %118 = arith.addf %117, %11 : vector<8x256xf32>
    %119 = vector.extract_strided_slice %118 {offsets = [0, 0], sizes = [8, 192], strides = [1, 1]} : vector<8x256xf32> to vector<8x192xf32>
    %120 = arith.negf %119 : vector<8x192xf32>
    %121 = math.exp %120 : vector<8x192xf32>
    %cst_29 = arith.constant 1.000000e+00 : f32
    %122 = vector.broadcast %cst_29 : f32 to vector<8x192xf32>
    %123 = arith.addf %122, %121 : vector<8x192xf32>
    %124 = arith.divf %122, %123 : vector<8x192xf32>
    %125 = vector.extract_strided_slice %118 {offsets = [0, 192], sizes = [8, 64], strides = [1, 1]} : vector<8x256xf32> to vector<8x64xf32>
    %126 = math.tanh %125 : vector<8x64xf32>
    %127 = vector.extract_strided_slice %124 {offsets = [0, 0], sizes = [8, 64], strides = [1, 1]} : vector<8x192xf32> to vector<8x64xf32>
    %128 = vector.extract_strided_slice %124 {offsets = [0, 64], sizes = [8, 64], strides = [1, 1]} : vector<8x192xf32> to vector<8x64xf32>
    %129 = vector.extract_strided_slice %124 {offsets = [0, 128], sizes = [8, 64], strides = [1, 1]} : vector<8x192xf32> to vector<8x64xf32>
    %130 = arith.mulf %128, %92 : vector<8x64xf32>
    %131 = arith.mulf %127, %126 : vector<8x64xf32>
    %132 = arith.addf %130, %131 : vector<8x64xf32>
    %133 = math.tanh %132 : vector<8x64xf32>
    %134 = arith.mulf %129, %133 : vector<8x64xf32>
    %c16 = arith.constant 16 : index
    %c0_30 = arith.constant 0 : index
    %135 = vector.load %arg10[%c16, %c0_30] : memref<64x64xf32, #tpu.memory_space<vmem>>, vector<8x64xf32>
    tpu.vector_store %arg10[%c16, %c0_30], %134 {strides = array<i32>} : memref<64x64xf32, #tpu.memory_space<vmem>>, vector<8x64xf32>,
    %136 = arith.truncf %114 : vector<8x32xf32> to vector<8x32xbf16>
    %cst_31 = arith.constant dense<0.000000e+00> : vector<8x128xf32>
    %137 = tpu.matmul %136, %7, %cst_31 {dimension_numbers = #tpu.dot_dimension_numbers<[1], [0], [0], [1], [0, 0, 1, 1], [], []>} : vector<8x32xbf16>, vector<32x128xbf16>, vector<8x128xf32> -> vector<8x128xf32>
    %138 = arith.addf %6, %137 : vector<8x128xf32>
    %139 = vector.extract_strided_slice %138 {offsets = [0, 0], sizes = [8, 96], strides = [1, 1]} : vector<8x128xf32> to vector<8x96xf32>
    %140 = arith.negf %139 : vector<8x96xf32>
    %141 = math.exp %140 : vector<8x96xf32>
    %cst_32 = arith.constant 1.000000e+00 : f32
    %142 = vector.broadcast %cst_32 : f32 to vector<8x96xf32>
    %143 = arith.addf %142, %141 : vector<8x96xf32>
    %144 = arith.divf %142, %143 : vector<8x96xf32>
    %145 = vector.extract_strided_slice %138 {offsets = [0, 96], sizes = [8, 32], strides = [1, 1]} : vector<8x128xf32> to vector<8x32xf32>
    %146 = math.tanh %145 : vector<8x32xf32>
    %147 = vector.extract_strided_slice %144 {offsets = [0, 0], sizes = [8, 32], strides = [1, 1]} : vector<8x96xf32> to vector<8x32xf32>
    %148 = vector.extract_strided_slice %144 {offsets = [0, 32], sizes = [8, 32], strides = [1, 1]} : vector<8x96xf32> to vector<8x32xf32>
    %149 = vector.extract_strided_slice %144 {offsets = [0, 64], sizes = [8, 32], strides = [1, 1]} : vector<8x96xf32> to vector<8x32xf32>
    %150 = arith.mulf %148, %112 : vector<8x32xf32>
    %151 = arith.mulf %147, %146 : vector<8x32xf32>
    %152 = arith.addf %150, %151 : vector<8x32xf32>
    %153 = math.tanh %152 : vector<8x32xf32>
    %154 = arith.mulf %149, %153 : vector<8x32xf32>
    %155 = tpu.concatenate %154, %134 in 1 : vector<8x32xf32>, vector<8x64xf32> -> vector<8x96xf32>
    %156 = arith.truncf %155 : vector<8x96xf32> to vector<8x96xbf16>
    %cst_33 = arith.constant dense<0.000000e+00> : vector<8x256xf32>
    %157 = tpu.matmul %156, %8, %cst_33 {dimension_numbers = #tpu.dot_dimension_numbers<[1], [0], [0], [1], [0, 0, 1, 1], [], []>} : vector<8x96xbf16>, vector<96x256xbf16>, vector<8x256xf32> -> vector<8x256xf32>
    %158 = arith.addf %157, %11 : vector<8x256xf32>
    %159 = vector.extract_strided_slice %158 {offsets = [0, 0], sizes = [8, 192], strides = [1, 1]} : vector<8x256xf32> to vector<8x192xf32>
    %160 = arith.negf %159 : vector<8x192xf32>
    %161 = math.exp %160 : vector<8x192xf32>
    %cst_34 = arith.constant 1.000000e+00 : f32
    %162 = vector.broadcast %cst_34 : f32 to vector<8x192xf32>
    %163 = arith.addf %162, %161 : vector<8x192xf32>
    %164 = arith.divf %162, %163 : vector<8x192xf32>
    %165 = vector.extract_strided_slice %158 {offsets = [0, 192], sizes = [8, 64], strides = [1, 1]} : vector<8x256xf32> to vector<8x64xf32>
    %166 = math.tanh %165 : vector<8x64xf32>
    %167 = vector.extract_strided_slice %164 {offsets = [0, 0], sizes = [8, 64], strides = [1, 1]} : vector<8x192xf32> to vector<8x64xf32>
    %168 = vector.extract_strided_slice %164 {offsets = [0, 64], sizes = [8, 64], strides = [1, 1]} : vector<8x192xf32> to vector<8x64xf32>
    %169 = vector.extract_strided_slice %164 {offsets = [0, 128], sizes = [8, 64], strides = [1, 1]} : vector<8x192xf32> to vector<8x64xf32>
    %170 = arith.mulf %168, %132 : vector<8x64xf32>
    %171 = arith.mulf %167, %166 : vector<8x64xf32>
    %172 = arith.addf %170, %171 : vector<8x64xf32>
    %173 = math.tanh %172 : vector<8x64xf32>
    %174 = arith.mulf %169, %173 : vector<8x64xf32>
    %c24 = arith.constant 24 : index
    %c0_35 = arith.constant 0 : index
    %175 = vector.load %arg10[%c24, %c0_35] : memref<64x64xf32, #tpu.memory_space<vmem>>, vector<8x64xf32>
    tpu.vector_store %arg10[%c24, %c0_35], %174 {strides = array<i32>} : memref<64x64xf32, #tpu.memory_space<vmem>>, vector<8x64xf32>,
    %176 = arith.truncf %154 : vector<8x32xf32> to vector<8x32xbf16>
    %cst_36 = arith.constant dense<0.000000e+00> : vector<8x128xf32>
    %177 = tpu.matmul %176, %7, %cst_36 {dimension_numbers = #tpu.dot_dimension_numbers<[1], [0], [0], [1], [0, 0, 1, 1], [], []>} : vector<8x32xbf16>, vector<32x128xbf16>, vector<8x128xf32> -> vector<8x128xf32>
    %178 = arith.addf %6, %177 : vector<8x128xf32>
    %179 = vector.extract_strided_slice %178 {offsets = [0, 0], sizes = [8, 96], strides = [1, 1]} : vector<8x128xf32> to vector<8x96xf32>
    %180 = arith.negf %179 : vector<8x96xf32>
    %181 = math.exp %180 : vector<8x96xf32>
    %cst_37 = arith.constant 1.000000e+00 : f32
    %182 = vector.broadcast %cst_37 : f32 to vector<8x96xf32>
    %183 = arith.addf %182, %181 : vector<8x96xf32>
    %184 = arith.divf %182, %183 : vector<8x96xf32>
    %185 = vector.extract_strided_slice %178 {offsets = [0, 96], sizes = [8, 32], strides = [1, 1]} : vector<8x128xf32> to vector<8x32xf32>
    %186 = math.tanh %185 : vector<8x32xf32>
    %187 = vector.extract_strided_slice %184 {offsets = [0, 0], sizes = [8, 32], strides = [1, 1]} : vector<8x96xf32> to vector<8x32xf32>
    %188 = vector.extract_strided_slice %184 {offsets = [0, 32], sizes = [8, 32], strides = [1, 1]} : vector<8x96xf32> to vector<8x32xf32>
    %189 = vector.extract_strided_slice %184 {offsets = [0, 64], sizes = [8, 32], strides = [1, 1]} : vector<8x96xf32> to vector<8x32xf32>
    %190 = arith.mulf %188, %152 : vector<8x32xf32>
    %191 = arith.mulf %187, %186 : vector<8x32xf32>
    %192 = arith.addf %190, %191 : vector<8x32xf32>
    %193 = math.tanh %192 : vector<8x32xf32>
    %194 = arith.mulf %189, %193 : vector<8x32xf32>
    %195 = tpu.concatenate %194, %174 in 1 : vector<8x32xf32>, vector<8x64xf32> -> vector<8x96xf32>
    %196 = arith.truncf %195 : vector<8x96xf32> to vector<8x96xbf16>
    %cst_38 = arith.constant dense<0.000000e+00> : vector<8x256xf32>
    %197 = tpu.matmul %196, %8, %cst_38 {dimension_numbers = #tpu.dot_dimension_numbers<[1], [0], [0], [1], [0, 0, 1, 1], [], []>} : vector<8x96xbf16>, vector<96x256xbf16>, vector<8x256xf32> -> vector<8x256xf32>
    %198 = arith.addf %197, %11 : vector<8x256xf32>
    %199 = vector.extract_strided_slice %198 {offsets = [0, 0], sizes = [8, 192], strides = [1, 1]} : vector<8x256xf32> to vector<8x192xf32>
    %200 = arith.negf %199 : vector<8x192xf32>
    %201 = math.exp %200 : vector<8x192xf32>
    %cst_39 = arith.constant 1.000000e+00 : f32
    %202 = vector.broadcast %cst_39 : f32 to vector<8x192xf32>
    %203 = arith.addf %202, %201 : vector<8x192xf32>
    %204 = arith.divf %202, %203 : vector<8x192xf32>
    %205 = vector.extract_strided_slice %198 {offsets = [0, 192], sizes = [8, 64], strides = [1, 1]} : vector<8x256xf32> to vector<8x64xf32>
    %206 = math.tanh %205 : vector<8x64xf32>
    %207 = vector.extract_strided_slice %204 {offsets = [0, 0], sizes = [8, 64], strides = [1, 1]} : vector<8x192xf32> to vector<8x64xf32>
    %208 = vector.extract_strided_slice %204 {offsets = [0, 64], sizes = [8, 64], strides = [1, 1]} : vector<8x192xf32> to vector<8x64xf32>
    %209 = vector.extract_strided_slice %204 {offsets = [0, 128], sizes = [8, 64], strides = [1, 1]} : vector<8x192xf32> to vector<8x64xf32>
    %210 = arith.mulf %208, %172 : vector<8x64xf32>
    %211 = arith.mulf %207, %206 : vector<8x64xf32>
    %212 = arith.addf %210, %211 : vector<8x64xf32>
    %213 = math.tanh %212 : vector<8x64xf32>
    %214 = arith.mulf %209, %213 : vector<8x64xf32>
    %c32 = arith.constant 32 : index
    %c0_40 = arith.constant 0 : index
    %215 = vector.load %arg10[%c32, %c0_40] : memref<64x64xf32, #tpu.memory_space<vmem>>, vector<8x64xf32>
    tpu.vector_store %arg10[%c32, %c0_40], %214 {strides = array<i32>} : memref<64x64xf32, #tpu.memory_space<vmem>>, vector<8x64xf32>,
    %216 = arith.truncf %194 : vector<8x32xf32> to vector<8x32xbf16>
    %cst_41 = arith.constant dense<0.000000e+00> : vector<8x128xf32>
    %217 = tpu.matmul %216, %7, %cst_41 {dimension_numbers = #tpu.dot_dimension_numbers<[1], [0], [0], [1], [0, 0, 1, 1], [], []>} : vector<8x32xbf16>, vector<32x128xbf16>, vector<8x128xf32> -> vector<8x128xf32>
    %218 = arith.addf %6, %217 : vector<8x128xf32>
    %219 = vector.extract_strided_slice %218 {offsets = [0, 0], sizes = [8, 96], strides = [1, 1]} : vector<8x128xf32> to vector<8x96xf32>
    %220 = arith.negf %219 : vector<8x96xf32>
    %221 = math.exp %220 : vector<8x96xf32>
    %cst_42 = arith.constant 1.000000e+00 : f32
    %222 = vector.broadcast %cst_42 : f32 to vector<8x96xf32>
    %223 = arith.addf %222, %221 : vector<8x96xf32>
    %224 = arith.divf %222, %223 : vector<8x96xf32>
    %225 = vector.extract_strided_slice %218 {offsets = [0, 96], sizes = [8, 32], strides = [1, 1]} : vector<8x128xf32> to vector<8x32xf32>
    %226 = math.tanh %225 : vector<8x32xf32>
    %227 = vector.extract_strided_slice %224 {offsets = [0, 0], sizes = [8, 32], strides = [1, 1]} : vector<8x96xf32> to vector<8x32xf32>
    %228 = vector.extract_strided_slice %224 {offsets = [0, 32], sizes = [8, 32], strides = [1, 1]} : vector<8x96xf32> to vector<8x32xf32>
    %229 = vector.extract_strided_slice %224 {offsets = [0, 64], sizes = [8, 32], strides = [1, 1]} : vector<8x96xf32> to vector<8x32xf32>
    %230 = arith.mulf %228, %192 : vector<8x32xf32>
    %231 = arith.mulf %227, %226 : vector<8x32xf32>
    %232 = arith.addf %230, %231 : vector<8x32xf32>
    %233 = math.tanh %232 : vector<8x32xf32>
    %234 = arith.mulf %229, %233 : vector<8x32xf32>
    %235 = tpu.concatenate %234, %214 in 1 : vector<8x32xf32>, vector<8x64xf32> -> vector<8x96xf32>
    %236 = arith.truncf %235 : vector<8x96xf32> to vector<8x96xbf16>
    %cst_43 = arith.constant dense<0.000000e+00> : vector<8x256xf32>
    %237 = tpu.matmul %236, %8, %cst_43 {dimension_numbers = #tpu.dot_dimension_numbers<[1], [0], [0], [1], [0, 0, 1, 1], [], []>} : vector<8x96xbf16>, vector<96x256xbf16>, vector<8x256xf32> -> vector<8x256xf32>
    %238 = arith.addf %237, %11 : vector<8x256xf32>
    %239 = vector.extract_strided_slice %238 {offsets = [0, 0], sizes = [8, 192], strides = [1, 1]} : vector<8x256xf32> to vector<8x192xf32>
    %240 = arith.negf %239 : vector<8x192xf32>
    %241 = math.exp %240 : vector<8x192xf32>
    %cst_44 = arith.constant 1.000000e+00 : f32
    %242 = vector.broadcast %cst_44 : f32 to vector<8x192xf32>
    %243 = arith.addf %242, %241 : vector<8x192xf32>
    %244 = arith.divf %242, %243 : vector<8x192xf32>
    %245 = vector.extract_strided_slice %238 {offsets = [0, 192], sizes = [8, 64], strides = [1, 1]} : vector<8x256xf32> to vector<8x64xf32>
    %246 = math.tanh %245 : vector<8x64xf32>
    %247 = vector.extract_strided_slice %244 {offsets = [0, 0], sizes = [8, 64], strides = [1, 1]} : vector<8x192xf32> to vector<8x64xf32>
    %248 = vector.extract_strided_slice %244 {offsets = [0, 64], sizes = [8, 64], strides = [1, 1]} : vector<8x192xf32> to vector<8x64xf32>
    %249 = vector.extract_strided_slice %244 {offsets = [0, 128], sizes = [8, 64], strides = [1, 1]} : vector<8x192xf32> to vector<8x64xf32>
    %250 = arith.mulf %248, %212 : vector<8x64xf32>
    %251 = arith.mulf %247, %246 : vector<8x64xf32>
    %252 = arith.addf %250, %251 : vector<8x64xf32>
    %253 = math.tanh %252 : vector<8x64xf32>
    %254 = arith.mulf %249, %253 : vector<8x64xf32>
    %c40 = arith.constant 40 : index
    %c0_45 = arith.constant 0 : index
    %255 = vector.load %arg10[%c40, %c0_45] : memref<64x64xf32, #tpu.memory_space<vmem>>, vector<8x64xf32>
    tpu.vector_store %arg10[%c40, %c0_45], %254 {strides = array<i32>} : memref<64x64xf32, #tpu.memory_space<vmem>>, vector<8x64xf32>,
    %256 = arith.truncf %234 : vector<8x32xf32> to vector<8x32xbf16>
    %cst_46 = arith.constant dense<0.000000e+00> : vector<8x128xf32>
    %257 = tpu.matmul %256, %7, %cst_46 {dimension_numbers = #tpu.dot_dimension_numbers<[1], [0], [0], [1], [0, 0, 1, 1], [], []>} : vector<8x32xbf16>, vector<32x128xbf16>, vector<8x128xf32> -> vector<8x128xf32>
    %258 = arith.addf %6, %257 : vector<8x128xf32>
    %259 = vector.extract_strided_slice %258 {offsets = [0, 0], sizes = [8, 96], strides = [1, 1]} : vector<8x128xf32> to vector<8x96xf32>
    %260 = arith.negf %259 : vector<8x96xf32>
    %261 = math.exp %260 : vector<8x96xf32>
    %cst_47 = arith.constant 1.000000e+00 : f32
    %262 = vector.broadcast %cst_47 : f32 to vector<8x96xf32>
    %263 = arith.addf %262, %261 : vector<8x96xf32>
    %264 = arith.divf %262, %263 : vector<8x96xf32>
    %265 = vector.extract_strided_slice %258 {offsets = [0, 96], sizes = [8, 32], strides = [1, 1]} : vector<8x128xf32> to vector<8x32xf32>
    %266 = math.tanh %265 : vector<8x32xf32>
    %267 = vector.extract_strided_slice %264 {offsets = [0, 0], sizes = [8, 32], strides = [1, 1]} : vector<8x96xf32> to vector<8x32xf32>
    %268 = vector.extract_strided_slice %264 {offsets = [0, 32], sizes = [8, 32], strides = [1, 1]} : vector<8x96xf32> to vector<8x32xf32>
    %269 = vector.extract_strided_slice %264 {offsets = [0, 64], sizes = [8, 32], strides = [1, 1]} : vector<8x96xf32> to vector<8x32xf32>
    %270 = arith.mulf %268, %232 : vector<8x32xf32>
    %271 = arith.mulf %267, %266 : vector<8x32xf32>
    %272 = arith.addf %270, %271 : vector<8x32xf32>
    %273 = math.tanh %272 : vector<8x32xf32>
    %274 = arith.mulf %269, %273 : vector<8x32xf32>
    %275 = tpu.concatenate %274, %254 in 1 : vector<8x32xf32>, vector<8x64xf32> -> vector<8x96xf32>
    %276 = arith.truncf %275 : vector<8x96xf32> to vector<8x96xbf16>
    %cst_48 = arith.constant dense<0.000000e+00> : vector<8x256xf32>
    %277 = tpu.matmul %276, %8, %cst_48 {dimension_numbers = #tpu.dot_dimension_numbers<[1], [0], [0], [1], [0, 0, 1, 1], [], []>} : vector<8x96xbf16>, vector<96x256xbf16>, vector<8x256xf32> -> vector<8x256xf32>
    %278 = arith.addf %277, %11 : vector<8x256xf32>
    %279 = vector.extract_strided_slice %278 {offsets = [0, 0], sizes = [8, 192], strides = [1, 1]} : vector<8x256xf32> to vector<8x192xf32>
    %280 = arith.negf %279 : vector<8x192xf32>
    %281 = math.exp %280 : vector<8x192xf32>
    %cst_49 = arith.constant 1.000000e+00 : f32
    %282 = vector.broadcast %cst_49 : f32 to vector<8x192xf32>
    %283 = arith.addf %282, %281 : vector<8x192xf32>
    %284 = arith.divf %282, %283 : vector<8x192xf32>
    %285 = vector.extract_strided_slice %278 {offsets = [0, 192], sizes = [8, 64], strides = [1, 1]} : vector<8x256xf32> to vector<8x64xf32>
    %286 = math.tanh %285 : vector<8x64xf32>
    %287 = vector.extract_strided_slice %284 {offsets = [0, 0], sizes = [8, 64], strides = [1, 1]} : vector<8x192xf32> to vector<8x64xf32>
    %288 = vector.extract_strided_slice %284 {offsets = [0, 64], sizes = [8, 64], strides = [1, 1]} : vector<8x192xf32> to vector<8x64xf32>
    %289 = vector.extract_strided_slice %284 {offsets = [0, 128], sizes = [8, 64], strides = [1, 1]} : vector<8x192xf32> to vector<8x64xf32>
    %290 = arith.mulf %288, %252 : vector<8x64xf32>
    %291 = arith.mulf %287, %286 : vector<8x64xf32>
    %292 = arith.addf %290, %291 : vector<8x64xf32>
    %293 = math.tanh %292 : vector<8x64xf32>
    %294 = arith.mulf %289, %293 : vector<8x64xf32>
    %c48 = arith.constant 48 : index
    %c0_50 = arith.constant 0 : index
    %295 = vector.load %arg10[%c48, %c0_50] : memref<64x64xf32, #tpu.memory_space<vmem>>, vector<8x64xf32>
    tpu.vector_store %arg10[%c48, %c0_50], %294 {strides = array<i32>} : memref<64x64xf32, #tpu.memory_space<vmem>>, vector<8x64xf32>,
    %296 = arith.truncf %274 : vector<8x32xf32> to vector<8x32xbf16>
    %cst_51 = arith.constant dense<0.000000e+00> : vector<8x128xf32>
    %297 = tpu.matmul %296, %7, %cst_51 {dimension_numbers = #tpu.dot_dimension_numbers<[1], [0], [0], [1], [0, 0, 1, 1], [], []>} : vector<8x32xbf16>, vector<32x128xbf16>, vector<8x128xf32> -> vector<8x128xf32>
    %298 = arith.addf %6, %297 : vector<8x128xf32>
    %299 = vector.extract_strided_slice %298 {offsets = [0, 0], sizes = [8, 96], strides = [1, 1]} : vector<8x128xf32> to vector<8x96xf32>
    %300 = arith.negf %299 : vector<8x96xf32>
    %301 = math.exp %300 : vector<8x96xf32>
    %cst_52 = arith.constant 1.000000e+00 : f32
    %302 = vector.broadcast %cst_52 : f32 to vector<8x96xf32>
    %303 = arith.addf %302, %301 : vector<8x96xf32>
    %304 = arith.divf %302, %303 : vector<8x96xf32>
    %305 = vector.extract_strided_slice %298 {offsets = [0, 96], sizes = [8, 32], strides = [1, 1]} : vector<8x128xf32> to vector<8x32xf32>
    %306 = math.tanh %305 : vector<8x32xf32>
    %307 = vector.extract_strided_slice %304 {offsets = [0, 0], sizes = [8, 32], strides = [1, 1]} : vector<8x96xf32> to vector<8x32xf32>
    %308 = vector.extract_strided_slice %304 {offsets = [0, 32], sizes = [8, 32], strides = [1, 1]} : vector<8x96xf32> to vector<8x32xf32>
    %309 = vector.extract_strided_slice %304 {offsets = [0, 64], sizes = [8, 32], strides = [1, 1]} : vector<8x96xf32> to vector<8x32xf32>
    %310 = arith.mulf %308, %272 : vector<8x32xf32>
    %311 = arith.mulf %307, %306 : vector<8x32xf32>
    %312 = arith.addf %310, %311 : vector<8x32xf32>
    %313 = math.tanh %312 : vector<8x32xf32>
    %314 = arith.mulf %309, %313 : vector<8x32xf32>
    %315 = tpu.concatenate %314, %294 in 1 : vector<8x32xf32>, vector<8x64xf32> -> vector<8x96xf32>
    %316 = arith.truncf %315 : vector<8x96xf32> to vector<8x96xbf16>
    %cst_53 = arith.constant dense<0.000000e+00> : vector<8x256xf32>
    %317 = tpu.matmul %316, %8, %cst_53 {dimension_numbers = #tpu.dot_dimension_numbers<[1], [0], [0], [1], [0, 0, 1, 1], [], []>} : vector<8x96xbf16>, vector<96x256xbf16>, vector<8x256xf32> -> vector<8x256xf32>
    %318 = arith.addf %317, %11 : vector<8x256xf32>
    %319 = vector.extract_strided_slice %318 {offsets = [0, 0], sizes = [8, 192], strides = [1, 1]} : vector<8x256xf32> to vector<8x192xf32>
    %320 = arith.negf %319 : vector<8x192xf32>
    %321 = math.exp %320 : vector<8x192xf32>
    %cst_54 = arith.constant 1.000000e+00 : f32
    %322 = vector.broadcast %cst_54 : f32 to vector<8x192xf32>
    %323 = arith.addf %322, %321 : vector<8x192xf32>
    %324 = arith.divf %322, %323 : vector<8x192xf32>
    %325 = vector.extract_strided_slice %318 {offsets = [0, 192], sizes = [8, 64], strides = [1, 1]} : vector<8x256xf32> to vector<8x64xf32>
    %326 = math.tanh %325 : vector<8x64xf32>
    %327 = vector.extract_strided_slice %324 {offsets = [0, 0], sizes = [8, 64], strides = [1, 1]} : vector<8x192xf32> to vector<8x64xf32>
    %328 = vector.extract_strided_slice %324 {offsets = [0, 64], sizes = [8, 64], strides = [1, 1]} : vector<8x192xf32> to vector<8x64xf32>
    %329 = vector.extract_strided_slice %324 {offsets = [0, 128], sizes = [8, 64], strides = [1, 1]} : vector<8x192xf32> to vector<8x64xf32>
    %330 = arith.mulf %328, %292 : vector<8x64xf32>
    %331 = arith.mulf %327, %326 : vector<8x64xf32>
    %332 = arith.addf %330, %331 : vector<8x64xf32>
    %333 = math.tanh %332 : vector<8x64xf32>
    %334 = arith.mulf %329, %333 : vector<8x64xf32>
    %c56 = arith.constant 56 : index
    %c0_55 = arith.constant 0 : index
    %335 = vector.load %arg10[%c56, %c0_55] : memref<64x64xf32, #tpu.memory_space<vmem>>, vector<8x64xf32>
    tpu.vector_store %arg10[%c56, %c0_55], %334 {strides = array<i32>} : memref<64x64xf32, #tpu.memory_space<vmem>>, vector<8x64xf32>,
    %c0_56 = arith.constant 0 : index
    %c0_57 = arith.constant 0 : index
    %336 = vector.load %arg10[%c0_56, %c0_57] : memref<64x64xf32, #tpu.memory_space<vmem>>, vector<64x64xf32>
    %337 = arith.truncf %336 : vector<64x64xf32> to vector<64x64xbf16>
    %c0_58 = arith.constant 0 : index
    %c0_59 = arith.constant 0 : index
    %338 = vector.load %arg7[%c0_58, %c0_59] : memref<64x128xbf16, #tpu.memory_space<vmem>>, vector<64x128xbf16>
    %cst_60 = arith.constant dense<0.000000e+00> : vector<64x128xf32>
    %339 = tpu.matmul %337, %338, %cst_60 {dimension_numbers = #tpu.dot_dimension_numbers<[1], [0], [0], [1], [0, 0, 1, 1], [], []>} : vector<64x64xbf16>, vector<64x128xbf16>, vector<64x128xf32> -> vector<64x128xf32>
    %c0_61 = arith.constant 0 : index
    %c0_62 = arith.constant 0 : index
    %340 = vector.load %arg8[%c0_61, %c0_62] : memref<1x128xf32, #tpu.memory_space<vmem>>, vector<1x128xf32>
    %341 = vector.broadcast %340 : vector<1x128xf32> to vector<64x128xf32>
    %342 = arith.addf %339, %341 : vector<64x128xf32>
    %c0_63 = arith.constant 0 : index
    %c0_64 = arith.constant 0 : index
    %343 = vector.load %arg9[%c0_63, %c0_64] : memref<64x128xf32, #tpu.memory_space<vmem>>, vector<64x128xf32>
    tpu.vector_store %arg9[%c0_63, %c0_64], %342 {strides = array<i32>} : memref<64x128xf32, #tpu.memory_space<vmem>>, vector<64x128xf32>,
    return
  }
  func.func @transform_0(%arg0: i32) -> (i32, i32) {
    %c0_i32 = arith.constant 0 : i32
    %c0_i32_0 = arith.constant 0 : i32
    %c0_i32_1 = arith.constant 0 : i32
    return %c0_i32, %c0_i32_0 : i32, i32
  }
  func.func @transform_1(%arg0: i32) -> (i32, i32) {
    %c0_i32 = arith.constant 0 : i32
    %c0_i32_0 = arith.constant 0 : i32
    %c0_i32_1 = arith.constant 0 : i32
    return %c0_i32, %c0_i32_0 : i32, i32
  }
  func.func @transform_2(%arg0: i32) -> (i32, i32) {
    %c0_i32 = arith.constant 0 : i32
    %c0_i32_0 = arith.constant 0 : i32
    %c0_i32_1 = arith.constant 0 : i32
    return %c0_i32, %c0_i32_0 : i32, i32
  }
  func.func @transform_3(%arg0: i32) -> (i32, i32) {
    %c0_i32 = arith.constant 0 : i32
    %c0_i32_0 = arith.constant 0 : i32
    %c0_i32_1 = arith.constant 0 : i32
    return %c0_i32, %c0_i32_0 : i32, i32
  }
  func.func @transform_4(%arg0: i32) -> (i32, i32) {
    %c0_i32 = arith.constant 0 : i32
    %c0_i32_0 = arith.constant 0 : i32
    %c0_i32_1 = arith.constant 0 : i32
    return %c0_i32, %c0_i32_0 : i32, i32
  }
  func.func @transform_5(%arg0: i32) -> (i32, i32) {
    %c0_i32 = arith.constant 0 : i32
    %c0_i32_0 = arith.constant 0 : i32
    %c0_i32_1 = arith.constant 0 : i32
    return %c0_i32, %c0_i32_0 : i32, i32
  }
  func.func @transform_6(%arg0: i32) -> (i32, i32) {
    %c0_i32 = arith.constant 0 : i32
    %c0_i32_0 = arith.constant 0 : i32
    %c0_i32_1 = arith.constant 0 : i32
    return %c0_i32, %c0_i32_0 : i32, i32
  }
  func.func @transform_7(%arg0: i32) -> (i32, i32) {
    %c0_i32 = arith.constant 0 : i32
    %c0_i32_0 = arith.constant 0 : i32
    %c0_i32_1 = arith.constant 0 : i32
    return %c0_i32, %c0_i32_0 : i32, i32
  }
  func.func @transform_8(%arg0: i32) -> (i32, i32) {
    %c0_i32 = arith.constant 0 : i32
    %c0_i32_0 = arith.constant 0 : i32
    %c0_i32_1 = arith.constant 0 : i32
    return %c0_i32, %c0_i32_0 : i32, i32
  }
}

</mosaic_0001>

<bundles_post_ra>
// kernel: tpu_custom_call.1
= control target key start
LH: loop header
LB: loop body
LE: loop exit
PB: predicated region body
PF: predicated region fallthrough
CT: control target
= control target key end

     0   :  { %13 = vsyncpa [#allocation4], 0  ;;  %s2745_s0 = inlined_call_operand.hbm [shape: f32[8,32], index: 0, kind: input, shape index: {}]   ;;  %s2746_s1 = inlined_call_operand.hbm [shape: bf16[32,128], index: 1, kind: input, shape index: {}]   ;;  %s2747_s2 = inlined_call_operand.hbm [shape: bf16[32,128], index: 2, kind: input, shape index: {}]   ;;  %s2748_s3 = inlined_call_operand.vmem [shape: f32[1,128], index: 3, kind: input, shape index: {}]   ;;  %s2749_s4 = inlined_call_operand.hbm [shape: bf16[96,256], index: 4, kind: input, shape index: {}]   ;;  %s2750_s5 = inlined_call_operand.vmem [shape: f32[1,256], index: 5, kind: input, shape index: {}]   ;;  %s2751_s6 = inlined_call_operand.hbm [shape: bf16[64,128], index: 6, kind: input, shape index: {}]   ;;  %s2752_s7 = inlined_call_operand.vmem [shape: f32[1,128], index: 7, kind: input, shape index: {}]   ;;  %s2753_s8 = inlined_call_operand.hbm [shape: f32[64,128], index: 8, kind: output, shape index: {}]  }
   0x1   :  { %14 = vsyncpa [#allocation7], 0 }
   0x2   :  { %15 = vsyncpa [#allocation10], 0 }
   0x3   :  { %16 = vsyncpa [#allocation5], 0  ;;  %s2213_s27 = smov [#allocation6]   ;;  %s2073_s9 = scalar_lea.hbm %s2746_s1, 256 }
   0x4   :  { %s32_s28 = sshll.u32 %s2213_s27, 4  ;;  %p2074_p0 = scmp.ne.s32.totalorder %s2746_s1, %s2073_s9  ;;  %s33_s28 = int_to_ptr.vmem [resolvable:$true] %s32_s28 }
   0x5   :  { %p2077_p1 = scmp.lt.u32.totalorder %s2073_s9, %s2746_s1 }
   0x7   :  { %p2079_p2 = pnand %p2077_p1, %p2074_p0 }
   0x9   :  { %2082 = shalt.err (!%p2079_p2)
}
   0xa   :  { %s2083_s14 = scalar_lea.vmem %s33_s28, 256  ;;  %p2088_p4 = scmp.lt.s32.totalorder %s33_s28, %s33_s28 }
   0xb   :  { %p2084_p3 = scmp.ne.s32.totalorder %s33_s28, %s2083_s14  ;;  %p2089_p5 = scmp.lt.s32.totalorder %s2083_s14, %s2083_s14 }
   0xd   :  { %p2090_p6 = por %p2089_p5, %p2088_p4 }
   0xf   :  { %p2091_p7 = pnand %p2090_p6, %p2084_p3 }
  0x11   :  { %2094 = shalt.err (!%p2091_p7)
}
  0x12   :  { %s2214_s15 = smov 64   ;;  %s2215_s16 = smov 4  }
  0x13   :  { %38 = dma.hbm_to_vmem [thread:$0]  %s2746_s1, 256, %s33_s28, [#allocation7], %s2214_s15, %s2214_s15, %s2215_s16  }
  0x14   :  { %s2216_s19 = smov [#allocation9]   ;;  %s2095_s23 = scalar_lea.hbm %s2749_s4, 1536 }
  0x15   :  { %s58_s20 = sshll.u32 %s2216_s19, 4  ;;  %p2096_p8 = scmp.ne.s32.totalorder %s2749_s4, %s2095_s23  ;;  %s59_s20 = int_to_ptr.vmem [resolvable:$true] %s58_s20 }
  0x16   :  { %p2099_p9 = scmp.lt.u32.totalorder %s2095_s23, %s2749_s4 }
  0x18   :  { %p2101_p10 = pnand %p2099_p9, %p2096_p8 }
  0x1a   :  { %2104 = shalt.err (!%p2101_p10)
}
  0x1b   :  { %s2105_s29 = scalar_lea.vmem %s59_s20, 1536  ;;  %p2110_p12 = scmp.lt.s32.totalorder %s59_s20, %s59_s20 }
  0x1c   :  { %p2106_p11 = scmp.ne.s32.totalorder %s59_s20, %s2105_s29  ;;  %p2111_p13 = scmp.lt.s32.totalorder %s2105_s29, %s2105_s29 }
  0x1e   :  { %p2112_p0 = por %p2111_p13, %p2110_p12 }
  0x20   :  { %p2113_p1 = pnand %p2112_p0, %p2106_p11 }
  0x22   :  { %2116 = shalt.err (!%p2113_p1)
}
  0x23   :  { %s2217_s1 = smov 128   ;;  %s2218_s28 = smov 8  }
  0x24   :  { %64 = dma.hbm_to_vmem [thread:$0]  %s2749_s4, 1536, %s59_s20, [#allocation10], %s2217_s1, %s2217_s1, %s2218_s28  }
  0x25   :  { %s2219_s10 = smov [#allocation3]   ;;  %s2220_s12 = smov [#allocation8]  }
  0x26   :  { %s23_s11 = sshll.u32 %s2219_s10, 4  ;;  %s44_s13 = sshll.u32 %s2220_s12, 4  ;;  %s24_s11 = int_to_ptr.vmem [resolvable:$true] %s23_s11  ;;  %s2302_s13 = int_to_ptr.vmem [resolvable:$true] %s44_s13 }
  0x27   :  { %s2117_s18 = scalar_lea.hbm %s2745_s0, 128 }
  0x28   :  { %p2118_p2 = scmp.ne.s32.totalorder %s2745_s0, %s2117_s18  ;;  %p2121_p3 = scmp.lt.u32.totalorder %s2117_s18, %s2745_s0 }
  0x2a   :  { %p2123_p4 = pnand %p2121_p3, %p2118_p2 }
  0x2c   :  { %2126 = shalt.err (!%p2123_p4)
}
  0x2d   :  { %s2127_s4 = scalar_lea.vmem %s24_s11, 128  ;;  %p2132_p6 = scmp.lt.s32.totalorder %s24_s11, %s24_s11 }
  0x2e   :  { %p2128_p5 = scmp.ne.s32.totalorder %s24_s11, %s2127_s4  ;;  %p2133_p7 = scmp.lt.s32.totalorder %s2127_s4, %s2127_s4 }
  0x30   :  { %p2134_p8 = por %p2133_p7, %p2132_p6 }
  0x32   :  { %p2135_p9 = pnand %p2134_p8, %p2128_p5 }
  0x34   :  { %2138 = shalt.err (!%p2135_p9)
}
  0x35   :  { %26 = dma.hbm_to_vmem [thread:$0]  %s2745_s0, 128, %s24_s11, [#allocation4]  }
  0x36   :  { %s2139_s27 = scalar_lea.hbm %s2747_s2, 256 }
  0x37   :  { %p2140_p10 = scmp.ne.s32.totalorder %s2747_s2, %s2139_s27  ;;  %p2143_p11 = scmp.lt.u32.totalorder %s2139_s27, %s2747_s2 }
  0x39   :  { %p2145_p12 = pnand %p2143_p11, %p2140_p10 }
  0x3b   :  { %2148 = shalt.err (!%p2145_p12)
}
  0x3c   :  { %s2149_s12 = scalar_lea.vmem %s2302_s13, 256  ;;  %p2154_p0 = scmp.lt.s32.totalorder %s2302_s13, %s2302_s13 }
  0x3d   :  { %p2150_p13 = scmp.ne.s32.totalorder %s2302_s13, %s2149_s12  ;;  %p2155_p1 = scmp.lt.s32.totalorder %s2149_s12, %s2149_s12 }
  0x3f   :  { %p2156_p2 = por %p2155_p1, %p2154_p0 }
  0x41   :  { %p2157_p3 = pnand %p2156_p2, %p2150_p13 }
  0x43   :  { %2160 = shalt.err (!%p2157_p3)
}
  0x44   :  { %50 = dma.hbm_to_vmem [thread:$0]  %s2747_s2, 256, %s2302_s13, [#allocation7], %s2214_s15, %s2214_s15, %s2215_s16  }
  0x45   :  { %s2221_s14 = smov [#allocation11]   ;;  %s2161_s21 = scalar_lea.hbm %s2751_s6, 512 }
  0x46   :  { %s72_s17 = sshll.u32 %s2221_s14, 4  ;;  %p2162_p4 = scmp.ne.s32.totalorder %s2751_s6, %s2161_s21  ;;  %s73_s17 = int_to_ptr.vmem [resolvable:$true] %s72_s17 }
  0x47   :  { %p2165_p5 = scmp.lt.u32.totalorder %s2161_s21, %s2751_s6 }
  0x49   :  { %p2167_p6 = pnand %p2165_p5, %p2162_p4 }
  0x4b   :  { %2170 = shalt.err (!%p2167_p6)
}
  0x4c   :  { %s2171_s24 = scalar_lea.vmem %s73_s17, 512  ;;  %p2176_p8 = scmp.lt.s32.totalorder %s73_s17, %s73_s17 }
  0x4d   :  { %p2172_p7 = scmp.ne.s32.totalorder %s73_s17, %s2171_s24  ;;  %p2177_p9 = scmp.lt.s32.totalorder %s2171_s24, %s2171_s24 }
  0x4f   :  { %p2178_p10 = por %p2177_p9, %p2176_p8 }
  0x51   :  { %p2179_p11 = pnand %p2178_p10, %p2172_p7 }
  0x53   :  { %2182 = shalt.err (!%p2179_p11)
}
  0x54   :  { %78 = dma.hbm_to_vmem [thread:$0]  %s2751_s6, 512, %s73_s17, [#allocation10], %s2214_s15, %s2214_s15, %s2215_s16  }
  0x55   :  { %2205 = dma.done.wait [#allocation4], 128  }
  0x56   :  { %2206 = vsyncadd [#allocation4], 4294967168 }
  0x57   :  { %2207 = dma.done.wait [#allocation7], 512  }
  0x58   :  { %2208 = vsyncadd [#allocation7], 4294966784 }
  0x59   :  { %2209 = dma.done.wait [#allocation10], 2048  }
  0x5a   :  { %2210 = vsyncadd [#allocation10], 4294965248  ;;  %v2222_v0 = vmov 0.0   ;;  %vm2223_vm0 = vmmov 0   ;;  %v2224_v1 = vmov 0   ;;  %v1874_v2 = vld [vmem:[#allocation6] sm:$0xff]   ;;  %v184_v49 = vlaneseq }
  0x5b   :  { %1772 = vmatprep.subr.bf16.mxu1 %v2222_v0  ;;  %1776 = vmatprep.mubr.msk.bf16.mxu1 %vm2223_vm0, %v2222_v0  ;;  %v1875_v3 = vld [vmem:[#allocation6 + $0x8] sm:$0xff]   ;;  %v97_v4 = vld [vmem:[#allocation3] sm:$0xff]  ;;  %v2356_v5 = vld [vmem:[#allocation8] sm:$0xff]   ;;  %vm122_vm1 = vcmask 261120   ;;  %s2225_s25 = smov 32   ;;  %vm340_vm2 = vcmask 785408  }
  0x5c   :  { %376 = vmatprep.mubr.bf16.mxu0 %v2224_v1  ;;  %1773 = vmatpush3.bf16.msra.mxu1 %v1874_v2  ;;  %v98_v6 = vpack.c.bf16 %v97_v4, %v97_v4  ;;  %v2359_v7 = vld [vmem:[#allocation8 + $0x8] sm:$0xff]   ;;  %v2385_v29 = vld [vmem:[#allocation9 + $0x4] ss:$8 sps:$4 sm:$0xff]   ;;  %v2387_v30 = vld [vmem:[#allocation9] ss:$8 sps:$4 sm:$0xff]   ;;  %v185_v50 = vshrl.u32 %v184_v49, 7 }
  0x5d   :  { %1774 = vmatprep.subr.bf16.mxu1 %v2222_v0  ;;  %v1671_v12 = vld [vmem:[%s2748_s3] ss:$0 sm:$0xff]  ;;  %v2389_v31 = vld [vmem:[#allocation9 + $0x14] ss:$8 sps:$4 sm:$0xff]   ;;  %344 = vmatprep.subr.bf16.mxu0 %v2385_v29  ;;  %v2397_v33 = vld [vmem:[#allocation9 + $0x24] ss:$8 sps:$4 sm:$0xff]  }
  0x5e   :  { %345 = vmatpush1.bf16.msra.mxu0 %v2387_v30  ;;  %v2394_v32 = vld [vmem:[#allocation9 + $0x10] ss:$8 sps:$4 sm:$0xff]   ;;  %v2400_v34 = vld [vmem:[#allocation9 + $0x20] ss:$8 sps:$4 sm:$0xff]   ;;  %v2403_v36 = vld [vmem:[#allocation9 + $0x34] ss:$8 sps:$4 sm:$0xff]  }
  0x5f   :  { %346 = vmatprep.subr.bf16.mxu0 %v2389_v31  ;;  %v2407_v37 = vld [vmem:[#allocation9 + $0x30] ss:$8 sps:$4 sm:$0xff]   ;;  %v2410_v38 = vld [vmem:[#allocation9 + $0x44] ss:$8 sps:$4 sm:$0xff]   ;;  %v2413_v39 = vld [vmem:[#allocation9 + $0x40] ss:$8 sps:$4 sm:$0xff]  }
  0x60   :  { %1775 = vmatpush3.bf16.msra.mxu1 %v1875_v3  ;;  %v2416_v40 = vld [vmem:[#allocation9 + $0x54] ss:$8 sps:$4 sm:$0xff]   ;;  %v2420_v41 = vld [vmem:[#allocation9 + $0x50] ss:$8 sps:$4 sm:$0xff]   ;;  %v186_v51 = vsub.s32 0, %v185_v50  ;;  %v190_v54 = vsub.s32 1, %v185_v50 }
  0x61   :  { %1780 = vmatprep.subr.bf16.mxu1 %v2222_v0  ;;  %v182_v52 = vld [vmem:[%s2750_s5] sm:$0x3]  ;;  %vm415_vm3 = vcmask 523264  }
  0x62   :  { %347 = vmatpush1.bf16.msra.mxu0 %v2394_v32  ;;  %v2451_v53 = vrot.slane %v182_v52, %v186_v51  ;;  %v2453_v56 = vrot.slane %v182_v52, %v190_v54 }
  0x63   :  { %1777 = vmatmul.mubr.msk.bf16.vlgmr.msra.gmra.mrb[0].mxu1 %vm122_vm1, %v98_v6  ;;  %348 = vmatprep.subr.bf16.mxu0 %v2397_v33 }
  0x64   :  { %1781 = vmatpush3.bf16.msra.mxu1 %v2356_v5  ;;  %1784 = vmatprep.mubr.msk.bf16.mxu1 %vm2223_vm0, %v2222_v0 }
  0x65   :  { %1782 = vmatprep.subr.bf16.mxu1 %v2222_v0 }
  0x66   :  { %349 = vmatpush1.bf16.msra.mxu0 %v2400_v34 }
  0x67   :  { %350 = vmatprep.subr.bf16.mxu0 %v2403_v36 }
  0x68   :  { %1783 = vmatpush3.bf16.msra.mxu1 %v2359_v7 }
  0x69   :  { %1788 = vmatprep.subr.bf16.mxu1 %v2222_v0 }
  0x6a   :  { %351 = vmatpush1.bf16.msra.mxu0 %v2407_v37 }
  0x6b   :  { %1785 = vmatmul.mubr.bf16.vlgmr.msra.gmra.mrb[4].mxu1 %v2224_v1  ;;  %352 = vmatprep.subr.bf16.mxu0 %v2410_v38 }
  0x6c   :  { %1789 = vmatpush3.bf16.msra.mxu1 %v2356_v5  ;;  %1792 = vmatprep.mubr.msk.bf16.mxu1 %vm2223_vm0, %v2222_v0 }
  0x6d   :  { %1790 = vmatprep.subr.bf16.mxu1 %v2222_v0 }
  0x6e   :  { %353 = vmatpush1.bf16.msra.mxu0 %v2413_v39 }
  0x6f   :  { %354 = vmatprep.subr.bf16.mxu0 %v2416_v40 }
  0x70   :  { %1791 = vmatpush3.bf16.msra.mxu1 %v2359_v7 }
  0x71   :  { %502 = vmatprep.subr.bf16.mxu1 %v2385_v29 }
  0x72   :  { %355 = vmatpush1.bf16.msra.mxu0 %v2420_v41 }
  0x73   :  { %1796 = vmatprep.subr.bf16.mxu0 %v2222_v0 }
 0x136   :  { %v160_v8 = vpop.f32.mrb[0].mxu1 }
 0x137   :  { %v1778_v9 = vpop.f32.mrb[1].mxu1  ;;  %v2377_v13 = vadd.f32 %v1671_v12, %v160_v8 }
 0x138   :  { %v163_v10 = vpop.f32.mrb[2].mxu1 }
 0x139   :  { %v1779_v11 = vpop.f32.mrb[3].mxu1 }
 0x13e   :  { %v243_v14 = vpop.f32.mrb[4].mxu1 }
 0x13f   :  { %v249_v15 = vadd.f32 %v243_v14, %v2377_v13  ;;  %v1786_v16 = vpop.f32.mrb[5].mxu1 }
 0x140   :  { %v246_v17 = vpop.f32.mrb[6].mxu1 }
 0x141   :  { %1900 = vtanh.f32 %v249_v15  ;;  %v1787_v18 = vpop.f32.mrb[7].mxu1  ;;  %v1677_v20 = vmul.f32 -1.442695, %v249_v15 }
 0x143   :  { %1902 = vpow2.f32 %v1677_v20 }
 0x14b   :  { %v1901_v19 = vpop.eup %1900 }
 0x14c   :  { %259 = vrot.lane.b32.xlu0 %v1901_v19, %s2225_s25 }
 0x14d   :  { %v1903_v21 = vpop.eup %1902 }
 0x14e   :  { %v253_v22 = vadd.f32 1.0, %v1903_v21 }
 0x150   :  { %1904 = vrcp.f32 %v253_v22 }
 0x15a   :  { %v1905_v23 = vpop.eup %1904 }
 0x15b   :  { %v257_v26 = vmul.f32 0.0, %v1905_v23 }
 0x1be   :  { %v260_v24 = vpop.permute.xlu0 %259 }
 0x1bf   :  { %v262_v25 = vmul.f32 %v1905_v23, %v260_v24 }
 0x1c1   :  { %264 = vrot.lane.b32.xlu0 %v262_v25, %s2225_s25 }
 0x233   :  { %v265_v27 = vpop.permute.xlu0 %264 }
 0x234   :  { %v2382_v28 = vadd.f32 %v265_v27, %v257_v26 }
 0x236   :  { %1906 = vtanh.f32 %v2382_v28 }
 0x240   :  { %v1907_v35 = vpop.eup %1906 }
 0x241   :  { %270 = vrot.lane.b32.xlu1 %v1907_v35, %s2225_s25 }
 0x2b3   :  { %v271_v42 = vpop.permute.xlu1 %270 }
 0x2b4   :  { %v273_v43 = vmul.f32 %v1905_v23, %v271_v42 }
 0x2b6   :  { %275 = vrot.lane.b32.xlu1 %v273_v43, %s2214_s15  ;;  %v417_v44 = vpack.c.bf16 %v273_v43, %v273_v43 }
 0x2b8   :  { %419 = vrot.lane.b32.xlu0 %v417_v44, %s2214_s15 }
 0x328   :  { %v276_v45 = vpop.permute.xlu1 %275 }
 0x329   :  { %v278_v46 = vsel %vm122_vm1, %v276_v45, 0.0 }
 0x32a   :  { %v279_v47 = vpack.c.bf16 %v278_v46, %v278_v46  ;;  %v420_v48 = vpop.permute.xlu0 %419 }
 0x32b   :  { %1793 = vmatmul.mubr.msk.bf16.vlgmr.msra.gmra.mrb[8].mxu1 %vm122_vm1, %v420_v48 }
 0x32c   :  { %1690 = vmatmul.mubr.msk.bf16.vlgmr.msra.gmra.mrb[0].mxu0 %vm340_vm2, %v279_v47  ;;  %503 = vmatpush1.bf16.msra.mxu1 %v2387_v30 }
 0x32d   :  { %504 = vmatprep.subr.bf16.mxu1 %v2389_v31  ;;  %1797 = vmatpush3.bf16.msra.mxu0 %v2356_v5 }
 0x32e   :  { %1798 = vmatprep.subr.bf16.mxu0 %v2222_v0  ;;  %1800 = vmatprep.mubr.msk.bf16.mxu0 %vm2223_vm0, %v2222_v0 }
 0x32f   :  { %534 = vmatprep.mubr.bf16.mxu1 %v2224_v1 }
 0x330   :  { %505 = vmatpush1.bf16.msra.mxu1 %v2394_v32 }
 0x331   :  { %506 = vmatprep.subr.bf16.mxu1 %v2397_v33  ;;  %1799 = vmatpush3.bf16.msra.mxu0 %v2359_v7 }
 0x332   :  { %659 = vmatprep.subr.bf16.mxu0 %v2385_v29 }
 0x334   :  { %507 = vmatpush1.bf16.msra.mxu1 %v2400_v34 }
 0x335   :  { %508 = vmatprep.subr.bf16.mxu1 %v2403_v36 }
 0x338   :  { %509 = vmatpush1.bf16.msra.mxu1 %v2407_v37 }
 0x339   :  { %510 = vmatprep.subr.bf16.mxu1 %v2410_v38 }
 0x33c   :  { %511 = vmatpush1.bf16.msra.mxu1 %v2413_v39 }
 0x33d   :  { %512 = vmatprep.subr.bf16.mxu1 %v2416_v40 }
 0x340   :  { %513 = vmatpush1.bf16.msra.mxu1 %v2420_v41 }
 0x341   :  { %1804 = vmatprep.subr.bf16.mxu1 %v2222_v0 }
 0x3fe   :  { %v458_v55 = vpop.f32.mrb[8].mxu1 }
 0x3ff   :  { %v464_v57 = vadd.f32 %v458_v55, %v2377_v13  ;;  %v378_v58 = vpop.f32.mrb[0].mxu0  ;;  %v1794_v59 = vpop.f32.mrb[9].mxu1 }
 0x400   :  { %v380_v60 = vpop.f32.mrb[1].mxu0  ;;  %v461_v61 = vpop.f32.mrb[10].mxu1  ;;  %v379_v9 = vadd.f32 %v378_v58, %v2451_v53 }
 0x401   :  { %1908 = vtanh.f32 %v464_v57  ;;  %v382_v62 = vpop.f32.mrb[2].mxu0  ;;  %v1795_v63 = vpop.f32.mrb[11].mxu1  ;;  %v381_v2 = vadd.f32 %v380_v60, %v2453_v56  ;;  %v1694_v8 = vmul.f32 -1.442695, %v464_v57 }
 0x402   :  { %v383_v3 = vpop.f32.mrb[3].mxu0  ;;  %v1691_v10 = vmul.f32 -1.442695, %v379_v9 }
 0x403   :  { %1910 = vtanh.f32 %v381_v2  ;;  %v1692_v43 = vmul.f32 -1.442695, %v381_v2 }
 0x404   :  { %1912 = vpow2.f32 %v1694_v8 }
 0x405   :  { %1914 = vpow2.f32 %v1691_v10 }
 0x40b   :  { %v1909_v4 = vpop.eup %1908 }
 0x40c   :  { %474 = vrot.lane.b32.xlu0 %v1909_v4, %s2225_s25 }
 0x40d   :  { %v1911_v6 = vpop.eup %1910 }
 0x40e   :  { %400 = vrot.lane.b32.xlu1 %v1911_v6, %s2214_s15  ;;  %v1913_v11 = vpop.eup %1912 }
 0x40f   :  { %v468_v12 = vadd.f32 1.0, %v1913_v11  ;;  %v1915_v14 = vpop.eup %1914 }
 0x410   :  { %v391_v15 = vadd.f32 1.0, %v1915_v14 }
 0x411   :  { %1916 = vrcp.f32 %v468_v12 }
 0x412   :  { %1918 = vrcp.f32 %v391_v15 }
 0x41b   :  { %v1917_v16 = vpop.eup %1916 }
 0x41c   :  { %v1919_v19 = vpop.eup %1918  ;;  %v472_v22 = vmul.f32 %v1917_v16, %v2382_v28 }
 0x41d   :  { %v398_v25 = vmul.f32 0.0, %v1919_v19 }
 0x47e   :  { %v475_v17 = vpop.permute.xlu0 %474 }
 0x47f   :  { %v477_v18 = vmul.f32 %v1917_v16, %v475_v17 }
 0x480   :  { %v401_v20 = vpop.permute.xlu1 %400 }
 0x481   :  { %479 = vrot.lane.b32.xlu0 %v477_v18, %s2225_s25  ;;  %v403_v21 = vmul.f32 %v1919_v19, %v401_v20 }
 0x483   :  { %405 = vrot.lane.b32.xlu1 %v403_v21, %s2214_s15 }
 0x4f3   :  { %v480_v23 = vpop.permute.xlu0 %479 }
 0x4f4   :  { %v2463_v24 = vadd.f32 %v480_v23, %v472_v22 }
 0x4f5   :  { %v406_v26 = vpop.permute.xlu1 %405 }
 0x4f6   :  { %1920 = vtanh.f32 %v2463_v24  ;;  %v2466_v27 = vadd.f32 %v406_v26, %v398_v25 }
 0x4f8   :  { %1922 = vtanh.f32 %v2466_v27 }
 0x4f9   :  { %1924 = vpow2.f32 %v1692_v43 }
 0x500   :  { %v1921_v35 = vpop.eup %1920 }
 0x501   :  { %485 = vrot.lane.b32.xlu0 %v1921_v35, %s2225_s25 }
 0x502   :  { %v1923_v42 = vpop.eup %1922 }
 0x503   :  { %411 = vrot.lane.b32.xlu1 %v1923_v42, %s2214_s15  ;;  %v1925_v28 = vpop.eup %1924 }
 0x504   :  { %v392_v44 = vadd.f32 1.0, %v1925_v28 }
 0x506   :  { %1926 = vrcp.f32 %v392_v44 }
 0x510   :  { %v1927_v47 = vpop.eup %1926 }
 0x573   :  { %v486_v45 = vpop.permute.xlu0 %485 }
 0x574   :  { %v488_v46 = vmul.f32 %v1917_v16, %v486_v45 }
 0x575   :  { %v412_v48 = vpop.permute.xlu1 %411 }
 0x576   :  { %490 = vrot.lane.b32.xlu1 %v488_v46, %s2214_s15  ;;  %v574_v49 = vpack.c.bf16 %v488_v46, %v488_v46  ;;  %v414_v50 = vmul.f32 %v1927_v47, %v412_v48 }
 0x578   :  { %416 = vst.msk [vmem:[#allocation2] sm:$0xff] %vm415_vm3, %v414_v50  ;;  %494 = vrot.lane.b32.xlu0 %v414_v50, %s2225_s25 }
 0x57a   :  { %576 = vrot.lane.b32.xlu1 %v574_v49, %s2214_s15 }
 0x5e8   :  { %v491_v51 = vpop.permute.xlu1 %490 }
 0x5ea   :  { %v495_v54 = vpop.permute.xlu0 %494 }
 0x5eb   :  { %v497_v55 = vsel %vm122_vm1, %v491_v51, %v495_v54 }
 0x5ec   :  { %v577_v52 = vpop.permute.xlu1 %576  ;;  %v498_v57 = vpack.c.bf16 %v497_v55, %v497_v55 }
 0x5ed   :  { %1801 = vmatmul.mubr.msk.bf16.vlgmr.msra.gmra.mrb[4].mxu0 %vm122_vm1, %v577_v52 }
 0x5ee   :  { %660 = vmatpush1.bf16.msra.mxu0 %v2387_v30  ;;  %691 = vmatprep.mubr.bf16.mxu0 %v2224_v1 }
 0x5ef   :  { %661 = vmatprep.subr.bf16.mxu0 %v2389_v31  ;;  %1695 = vmatmul.mubr.msk.bf16.vlgmr.msra.gmra.mrb[12].mxu1 %vm340_vm2, %v498_v57 }
 0x5f0   :  { %1805 = vmatpush3.bf16.msra.mxu1 %v2356_v5  ;;  %1808 = vmatprep.mubr.msk.bf16.mxu1 %vm2223_vm0, %v2222_v0 }
 0x5f1   :  { %1806 = vmatprep.subr.bf16.mxu1 %v2222_v0 }
 0x5f2   :  { %662 = vmatpush1.bf16.msra.mxu0 %v2394_v32 }
 0x5f3   :  { %663 = vmatprep.subr.bf16.mxu0 %v2397_v33 }
 0x5f4   :  { %1807 = vmatpush3.bf16.msra.mxu1 %v2359_v7 }
 0x5f5   :  { %816 = vmatprep.subr.bf16.mxu1 %v2385_v29 }
 0x5f6   :  { %664 = vmatpush1.bf16.msra.mxu0 %v2400_v34 }
 0x5f7   :  { %665 = vmatprep.subr.bf16.mxu0 %v2403_v36 }
 0x5fa   :  { %666 = vmatpush1.bf16.msra.mxu0 %v2407_v37 }
 0x5fb   :  { %667 = vmatprep.subr.bf16.mxu0 %v2410_v38 }
 0x5fe   :  { %668 = vmatpush1.bf16.msra.mxu0 %v2413_v39 }
 0x5ff   :  { %669 = vmatprep.subr.bf16.mxu0 %v2416_v40 }
 0x602   :  { %670 = vmatpush1.bf16.msra.mxu0 %v2420_v41 }
 0x603   :  { %1812 = vmatprep.subr.bf16.mxu0 %v2222_v0 }
 0x6c0   :  { %v615_v58 = vpop.f32.mrb[4].mxu0 }
 0x6c1   :  { %v621_v59 = vadd.f32 %v615_v58, %v2377_v13  ;;  %v1802_v60 = vpop.f32.mrb[5].mxu0 }
 0x6c2   :  { %v618_v61 = vpop.f32.mrb[6].mxu0  ;;  %v536_v63 = vpop.f32.mrb[12].mxu1 }
 0x6c3   :  { %1928 = vtanh.f32 %v621_v59  ;;  %v1803_v62 = vpop.f32.mrb[7].mxu0  ;;  %v538_v2 = vpop.f32.mrb[13].mxu1  ;;  %v1699_v10 = vmul.f32 -1.442695, %v621_v59  ;;  %v537_v11 = vadd.f32 %v536_v63, %v2451_v53 }
 0x6c4   :  { %v539_v3 = vadd.f32 %v538_v2, %v2453_v56  ;;  %v540_v4 = vpop.f32.mrb[14].mxu1 }
 0x6c5   :  { %v541_v6 = vpop.f32.mrb[15].mxu1  ;;  %v1696_v12 = vmul.f32 -1.442695, %v537_v11 }
 0x6c6   :  { %1930 = vtanh.f32 %v539_v3  ;;  %v1697_v46 = vmul.f32 -1.442695, %v539_v3 }
 0x6c7   :  { %1932 = vpow2.f32 %v1699_v10 }
 0x6c8   :  { %1934 = vpow2.f32 %v1696_v12 }
 0x6cd   :  { %v1929_v8 = vpop.eup %1928 }
 0x6ce   :  { %631 = vrot.lane.b32.xlu1 %v1929_v8, %s2225_s25 }
 0x6d0   :  { %v1931_v9 = vpop.eup %1930 }
 0x6d1   :  { %558 = vrot.lane.b32.xlu0 %v1931_v9, %s2214_s15  ;;  %v1933_v14 = vpop.eup %1932 }
 0x6d2   :  { %v625_v15 = vadd.f32 1.0, %v1933_v14  ;;  %v1935_v16 = vpop.eup %1934 }
 0x6d3   :  { %v549_v17 = vadd.f32 1.0, %v1935_v16 }
 0x6d4   :  { %1936 = vrcp.f32 %v625_v15 }
 0x6d5   :  { %1938 = vrcp.f32 %v549_v17 }
 0x6de   :  { %v1937_v18 = vpop.eup %1936 }
 0x6df   :  { %v1939_v21 = vpop.eup %1938  ;;  %v629_v25 = vmul.f32 %v1937_v18, %v2463_v24 }
 0x6e0   :  { %v556_v42 = vmul.f32 %v1939_v21, %v2466_v27 }
 0x740   :  { %v632_v19 = vpop.permute.xlu1 %631 }
 0x741   :  { %v634_v20 = vmul.f32 %v1937_v18, %v632_v19 }
 0x743   :  { %636 = vrot.lane.b32.xlu1 %v634_v20, %s2225_s25  ;;  %v559_v22 = vpop.permute.xlu0 %558 }
 0x744   :  { %v561_v23 = vmul.f32 %v1939_v21, %v559_v22 }
 0x746   :  { %563 = vrot.lane.b32.xlu0 %v561_v23, %s2214_s15 }
 0x7b5   :  { %v637_v26 = vpop.permute.xlu1 %636 }
 0x7b6   :  { %v2505_v35 = vadd.f32 %v637_v26, %v629_v25 }
 0x7b8   :  { %1940 = vtanh.f32 %v2505_v35  ;;  %v564_v43 = vpop.permute.xlu0 %563 }
 0x7b9   :  { %v2509_v28 = vadd.f32 %v564_v43, %v556_v42 }
 0x7bb   :  { %1942 = vtanh.f32 %v2509_v28 }
 0x7bc   :  { %1944 = vpow2.f32 %v1697_v46 }
 0x7c2   :  { %v1941_v44 = vpop.eup %1940 }
 0x7c3   :  { %642 = vrot.lane.b32.xlu1 %v1941_v44, %s2225_s25 }
 0x7c5   :  { %v1943_v45 = vpop.eup %1942 }
 0x7c6   :  { %569 = vrot.lane.b32.xlu0 %v1943_v45, %s2214_s15  ;;  %v1945_v24 = vpop.eup %1944 }
 0x7c7   :  { %v550_v47 = vadd.f32 1.0, %v1945_v24 }
 0x7c9   :  { %1946 = vrcp.f32 %v550_v47 }
 0x7d3   :  { %v1947_v27 = vpop.eup %1946 }
 0x835   :  { %v643_v48 = vpop.permute.xlu1 %642 }
 0x836   :  { %v645_v49 = vmul.f32 %v1937_v18, %v643_v48 }
 0x838   :  { %647 = vrot.lane.b32.xlu0 %v645_v49, %s2214_s15  ;;  %v570_v50 = vpop.permute.xlu0 %569  ;;  %v731_v51 = vpack.c.bf16 %v645_v49, %v645_v49 }
 0x839   :  { %v572_v52 = vmul.f32 %v1947_v27, %v570_v50 }
 0x83b   :  { %573 = vst.msk [vmem:[#allocation2 + $0x8] sm:$0xff] %vm415_vm3, %v572_v52  ;;  %651 = vrot.lane.b32.xlu1 %v572_v52, %s2225_s25 }
 0x83c   :  { %733 = vrot.lane.b32.xlu0 %v731_v51, %s2214_s15 }
 0x8aa   :  { %v648_v54 = vpop.permute.xlu0 %647 }
 0x8ad   :  { %v652_v57 = vpop.permute.xlu1 %651 }
 0x8ae   :  { %v734_v55 = vpop.permute.xlu0 %733  ;;  %v654_v58 = vsel %vm122_vm1, %v648_v54, %v652_v57 }
 0x8af   :  { %1809 = vmatmul.mubr.msk.bf16.vlgmr.msra.gmra.mrb[16].mxu1 %vm122_vm1, %v734_v55  ;;  %v655_v59 = vpack.c.bf16 %v654_v58, %v654_v58 }
 0x8b0   :  { %817 = vmatpush1.bf16.msra.mxu1 %v2387_v30  ;;  %848 = vmatprep.mubr.bf16.mxu1 %v2224_v1 }
 0x8b1   :  { %818 = vmatprep.subr.bf16.mxu1 %v2389_v31  ;;  %1700 = vmatmul.mubr.msk.bf16.vlgmr.msra.gmra.mrb[8].mxu0 %vm340_vm2, %v655_v59 }
 0x8b2   :  { %1813 = vmatpush3.bf16.msra.mxu0 %v2356_v5  ;;  %1816 = vmatprep.mubr.msk.bf16.mxu0 %vm2223_vm0, %v2222_v0 }
 0x8b3   :  { %1814 = vmatprep.subr.bf16.mxu0 %v2222_v0 }
 0x8b4   :  { %819 = vmatpush1.bf16.msra.mxu1 %v2394_v32 }
 0x8b5   :  { %820 = vmatprep.subr.bf16.mxu1 %v2397_v33 }
 0x8b6   :  { %1815 = vmatpush3.bf16.msra.mxu0 %v2359_v7 }
 0x8b7   :  { %973 = vmatprep.subr.bf16.mxu0 %v2385_v29 }
 0x8b8   :  { %821 = vmatpush1.bf16.msra.mxu1 %v2400_v34 }
 0x8b9   :  { %822 = vmatprep.subr.bf16.mxu1 %v2403_v36 }
 0x8bc   :  { %823 = vmatpush1.bf16.msra.mxu1 %v2407_v37 }
 0x8bd   :  { %824 = vmatprep.subr.bf16.mxu1 %v2410_v38 }
 0x8c0   :  { %825 = vmatpush1.bf16.msra.mxu1 %v2413_v39 }
 0x8c1   :  { %826 = vmatprep.subr.bf16.mxu1 %v2416_v40 }
 0x8c4   :  { %827 = vmatpush1.bf16.msra.mxu1 %v2420_v41 }
 0x8c5   :  { %1820 = vmatprep.subr.bf16.mxu1 %v2222_v0 }
 0x982   :  { %v772_v60 = vpop.f32.mrb[16].mxu1 }
 0x983   :  { %v778_v61 = vadd.f32 %v772_v60, %v2377_v13  ;;  %v1810_v62 = vpop.f32.mrb[17].mxu1 }
 0x984   :  { %v775_v63 = vpop.f32.mrb[18].mxu1  ;;  %v693_v3 = vpop.f32.mrb[8].mxu0 }
 0x985   :  { %1948 = vtanh.f32 %v778_v61  ;;  %v1811_v2 = vpop.f32.mrb[19].mxu1  ;;  %v695_v4 = vpop.f32.mrb[9].mxu0  ;;  %v1704_v12 = vmul.f32 -1.442695, %v778_v61  ;;  %v694_v14 = vadd.f32 %v693_v3, %v2451_v53 }
 0x986   :  { %v696_v6 = vadd.f32 %v695_v4, %v2453_v56  ;;  %v697_v8 = vpop.f32.mrb[10].mxu0 }
 0x987   :  { %v698_v9 = vpop.f32.mrb[11].mxu0  ;;  %v1701_v15 = vmul.f32 -1.442695, %v694_v14 }
 0x988   :  { %1950 = vtanh.f32 %v696_v6  ;;  %v1702_v49 = vmul.f32 -1.442695, %v696_v6 }
 0x989   :  { %1952 = vpow2.f32 %v1704_v12 }
 0x98a   :  { %1954 = vpow2.f32 %v1701_v15 }
 0x98f   :  { %v1949_v10 = vpop.eup %1948 }
 0x990   :  { %788 = vrot.lane.b32.xlu0 %v1949_v10, %s2225_s25 }
 0x992   :  { %v1951_v11 = vpop.eup %1950 }
 0x993   :  { %715 = vrot.lane.b32.xlu1 %v1951_v11, %s2214_s15  ;;  %v1953_v16 = vpop.eup %1952 }
 0x994   :  { %v782_v17 = vadd.f32 1.0, %v1953_v16  ;;  %v1955_v18 = vpop.eup %1954 }
 0x995   :  { %v706_v19 = vadd.f32 1.0, %v1955_v18 }
 0x996   :  { %1956 = vrcp.f32 %v782_v17 }
 0x997   :  { %1958 = vrcp.f32 %v706_v19 }
 0x9a0   :  { %v1957_v20 = vpop.eup %1956 }
 0x9a1   :  { %v1959_v23 = vpop.eup %1958  ;;  %v786_v42 = vmul.f32 %v1957_v20, %v2505_v35 }
 0x9a2   :  { %v713_v45 = vmul.f32 %v1959_v23, %v2509_v28 }
 0xa02   :  { %v789_v21 = vpop.permute.xlu0 %788 }
 0xa03   :  { %v791_v22 = vmul.f32 %v1957_v20, %v789_v21 }
 0xa05   :  { %793 = vrot.lane.b32.xlu0 %v791_v22, %s2225_s25  ;;  %v716_v25 = vpop.permute.xlu1 %715 }
 0xa06   :  { %v718_v26 = vmul.f32 %v1959_v23, %v716_v25 }
 0xa08   :  { %720 = vrot.lane.b32.xlu1 %v718_v26, %s2214_s15 }
 0xa77   :  { %v794_v43 = vpop.permute.xlu0 %793 }
 0xa78   :  { %v2548_v44 = vadd.f32 %v794_v43, %v786_v42 }
 0xa7a   :  { %1960 = vtanh.f32 %v2548_v44  ;;  %v721_v46 = vpop.permute.xlu1 %720 }
 0xa7b   :  { %v2552_v24 = vadd.f32 %v721_v46, %v713_v45 }
 0xa7d   :  { %1962 = vtanh.f32 %v2552_v24 }
 0xa7e   :  { %1964 = vpow2.f32 %v1702_v49 }
 0xa84   :  { %v1961_v47 = vpop.eup %1960 }
 0xa85   :  { %799 = vrot.lane.b32.xlu0 %v1961_v47, %s2225_s25 }
 0xa87   :  { %v1963_v48 = vpop.eup %1962 }
 0xa88   :  { %726 = vrot.lane.b32.xlu1 %v1963_v48, %s2214_s15  ;;  %v1965_v35 = vpop.eup %1964 }
 0xa89   :  { %v707_v27 = vadd.f32 1.0, %v1965_v35 }
 0xa8b   :  { %1966 = vrcp.f32 %v707_v27 }
 0xa95   :  { %v1967_v28 = vpop.eup %1966 }
 0xaf7   :  { %v800_v50 = vpop.permute.xlu0 %799 }
 0xaf8   :  { %v802_v51 = vmul.f32 %v1957_v20, %v800_v50 }
 0xafa   :  { %804 = vrot.lane.b32.xlu1 %v802_v51, %s2214_s15  ;;  %v727_v52 = vpop.permute.xlu1 %726  ;;  %v888_v54 = vpack.c.bf16 %v802_v51, %v802_v51 }
 0xafb   :  { %v729_v55 = vmul.f32 %v1967_v28, %v727_v52 }
 0xafd   :  { %730 = vst.msk [vmem:[#allocation2 + $0x10] sm:$0xff] %vm415_vm3, %v729_v55  ;;  %808 = vrot.lane.b32.xlu0 %v729_v55, %s2225_s25 }
 0xafe   :  { %890 = vrot.lane.b32.xlu1 %v888_v54, %s2214_s15 }
 0xb6c   :  { %v805_v57 = vpop.permute.xlu1 %804 }
 0xb6f   :  { %v809_v59 = vpop.permute.xlu0 %808 }
 0xb70   :  { %v891_v58 = vpop.permute.xlu1 %890  ;;  %v811_v60 = vsel %vm122_vm1, %v805_v57, %v809_v59 }
 0xb71   :  { %1817 = vmatmul.mubr.msk.bf16.vlgmr.msra.gmra.mrb[12].mxu0 %vm122_vm1, %v891_v58  ;;  %v812_v61 = vpack.c.bf16 %v811_v60, %v811_v60 }
 0xb72   :  { %974 = vmatpush1.bf16.msra.mxu0 %v2387_v30  ;;  %1005 = vmatprep.mubr.bf16.mxu0 %v2224_v1 }
 0xb73   :  { %975 = vmatprep.subr.bf16.mxu0 %v2389_v31  ;;  %1705 = vmatmul.mubr.msk.bf16.vlgmr.msra.gmra.mrb[20].mxu1 %vm340_vm2, %v812_v61 }
 0xb74   :  { %1821 = vmatpush3.bf16.msra.mxu1 %v2356_v5  ;;  %1824 = vmatprep.mubr.msk.bf16.mxu1 %vm2223_vm0, %v2222_v0 }
 0xb75   :  { %1822 = vmatprep.subr.bf16.mxu1 %v2222_v0 }
 0xb76   :  { %976 = vmatpush1.bf16.msra.mxu0 %v2394_v32 }
 0xb77   :  { %977 = vmatprep.subr.bf16.mxu0 %v2397_v33 }
 0xb78   :  { %1823 = vmatpush3.bf16.msra.mxu1 %v2359_v7 }
 0xb79   :  { %1130 = vmatprep.subr.bf16.mxu1 %v2385_v29 }
 0xb7a   :  { %978 = vmatpush1.bf16.msra.mxu0 %v2400_v34 }
 0xb7b   :  { %979 = vmatprep.subr.bf16.mxu0 %v2403_v36 }
 0xb7e   :  { %980 = vmatpush1.bf16.msra.mxu0 %v2407_v37 }
 0xb7f   :  { %981 = vmatprep.subr.bf16.mxu0 %v2410_v38 }
 0xb82   :  { %982 = vmatpush1.bf16.msra.mxu0 %v2413_v39 }
 0xb83   :  { %983 = vmatprep.subr.bf16.mxu0 %v2416_v40 }
 0xb86   :  { %984 = vmatpush1.bf16.msra.mxu0 %v2420_v41 }
 0xb87   :  { %1828 = vmatprep.subr.bf16.mxu0 %v2222_v0 }
 0xc44   :  { %v929_v62 = vpop.f32.mrb[12].mxu0 }
 0xc45   :  { %v935_v63 = vadd.f32 %v929_v62, %v2377_v13  ;;  %v1818_v2 = vpop.f32.mrb[13].mxu0 }
 0xc46   :  { %v932_v3 = vpop.f32.mrb[14].mxu0  ;;  %v850_v6 = vpop.f32.mrb[20].mxu1 }
 0xc47   :  { %1968 = vtanh.f32 %v935_v63  ;;  %v1819_v4 = vpop.f32.mrb[15].mxu0  ;;  %v852_v8 = vpop.f32.mrb[21].mxu1  ;;  %v1709_v15 = vmul.f32 -1.442695, %v935_v63  ;;  %v851_v16 = vadd.f32 %v850_v6, %v2451_v53 }
 0xc48   :  { %v853_v9 = vadd.f32 %v852_v8, %v2453_v56  ;;  %v854_v10 = vpop.f32.mrb[22].mxu1 }
 0xc49   :  { %v855_v11 = vpop.f32.mrb[23].mxu1  ;;  %v1706_v17 = vmul.f32 -1.442695, %v851_v16 }
 0xc4a   :  { %1970 = vtanh.f32 %v853_v9  ;;  %v1707_v51 = vmul.f32 -1.442695, %v853_v9 }
 0xc4b   :  { %1972 = vpow2.f32 %v1709_v15 }
 0xc4c   :  { %1974 = vpow2.f32 %v1706_v17 }
 0xc51   :  { %v1969_v12 = vpop.eup %1968 }
 0xc52   :  { %945 = vrot.lane.b32.xlu1 %v1969_v12, %s2225_s25 }
 0xc54   :  { %v1971_v14 = vpop.eup %1970 }
 0xc55   :  { %872 = vrot.lane.b32.xlu0 %v1971_v14, %s2214_s15  ;;  %v1973_v18 = vpop.eup %1972 }
 0xc56   :  { %v939_v19 = vadd.f32 1.0, %v1973_v18  ;;  %v1975_v20 = vpop.eup %1974 }
 0xc57   :  { %v863_v21 = vadd.f32 1.0, %v1975_v20 }
 0xc58   :  { %1976 = vrcp.f32 %v939_v19 }
 0xc59   :  { %1978 = vrcp.f32 %v863_v21 }
 0xc62   :  { %v1977_v22 = vpop.eup %1976 }
 0xc63   :  { %v1979_v26 = vpop.eup %1978  ;;  %v943_v45 = vmul.f32 %v1977_v22, %v2548_v44 }
 0xc64   :  { %v870_v48 = vmul.f32 %v1979_v26, %v2552_v24 }
 0xcc4   :  { %v946_v23 = vpop.permute.xlu1 %945 }
 0xcc5   :  { %v948_v25 = vmul.f32 %v1977_v22, %v946_v23 }
 0xcc7   :  { %950 = vrot.lane.b32.xlu1 %v948_v25, %s2225_s25  ;;  %v873_v42 = vpop.permute.xlu0 %872 }
 0xcc8   :  { %v875_v43 = vmul.f32 %v1979_v26, %v873_v42 }
 0xcca   :  { %877 = vrot.lane.b32.xlu0 %v875_v43, %s2214_s15 }
 0xd39   :  { %v951_v46 = vpop.permute.xlu1 %950 }
 0xd3a   :  { %v2591_v47 = vadd.f32 %v951_v46, %v943_v45 }
 0xd3c   :  { %1980 = vtanh.f32 %v2591_v47  ;;  %v878_v49 = vpop.permute.xlu0 %877 }
 0xd3d   :  { %v2595_v35 = vadd.f32 %v878_v49, %v870_v48 }
 0xd3f   :  { %1982 = vtanh.f32 %v2595_v35 }
 0xd40   :  { %1984 = vpow2.f32 %v1707_v51 }
 0xd46   :  { %v1981_v27 = vpop.eup %1980 }
 0xd47   :  { %956 = vrot.lane.b32.xlu1 %v1981_v27, %s2225_s25 }
 0xd49   :  { %v1983_v50 = vpop.eup %1982 }
 0xd4a   :  { %883 = vrot.lane.b32.xlu0 %v1983_v50, %s2214_s15  ;;  %v1985_v44 = vpop.eup %1984 }
 0xd4b   :  { %v864_v28 = vadd.f32 1.0, %v1985_v44 }
 0xd4d   :  { %1986 = vrcp.f32 %v864_v28 }
 0xd57   :  { %v1987_v24 = vpop.eup %1986 }
 0xdb9   :  { %v957_v52 = vpop.permute.xlu1 %956 }
 0xdba   :  { %v959_v54 = vmul.f32 %v1977_v22, %v957_v52 }
 0xdbc   :  { %961 = vrot.lane.b32.xlu0 %v959_v54, %s2214_s15  ;;  %v884_v55 = vpop.permute.xlu0 %883  ;;  %v1045_v57 = vpack.c.bf16 %v959_v54, %v959_v54 }
 0xdbd   :  { %v886_v58 = vmul.f32 %v1987_v24, %v884_v55 }
 0xdbf   :  { %887 = vst.msk [vmem:[#allocation2 + $0x18] sm:$0xff] %vm415_vm3, %v886_v58  ;;  %965 = vrot.lane.b32.xlu1 %v886_v58, %s2225_s25 }
 0xdc0   :  { %1047 = vrot.lane.b32.xlu0 %v1045_v57, %s2214_s15 }
 0xe2e   :  { %v962_v59 = vpop.permute.xlu0 %961 }
 0xe31   :  { %v966_v61 = vpop.permute.xlu1 %965 }
 0xe32   :  { %v1048_v60 = vpop.permute.xlu0 %1047  ;;  %v968_v62 = vsel %vm122_vm1, %v962_v59, %v966_v61 }
 0xe33   :  { %1825 = vmatmul.mubr.msk.bf16.vlgmr.msra.gmra.mrb[24].mxu1 %vm122_vm1, %v1048_v60  ;;  %v969_v63 = vpack.c.bf16 %v968_v62, %v968_v62 }
 0xe34   :  { %1131 = vmatpush1.bf16.msra.mxu1 %v2387_v30  ;;  %1162 = vmatprep.mubr.bf16.mxu1 %v2224_v1 }
 0xe35   :  { %1132 = vmatprep.subr.bf16.mxu1 %v2389_v31  ;;  %1710 = vmatmul.mubr.msk.bf16.vlgmr.msra.gmra.mrb[16].mxu0 %vm340_vm2, %v969_v63 }
 0xe36   :  { %1829 = vmatpush3.bf16.msra.mxu0 %v2356_v5  ;;  %1832 = vmatprep.mubr.msk.bf16.mxu0 %vm2223_vm0, %v2222_v0 }
 0xe37   :  { %1830 = vmatprep.subr.bf16.mxu0 %v2222_v0 }
 0xe38   :  { %1133 = vmatpush1.bf16.msra.mxu1 %v2394_v32 }
 0xe39   :  { %1134 = vmatprep.subr.bf16.mxu1 %v2397_v33 }
 0xe3a   :  { %1831 = vmatpush3.bf16.msra.mxu0 %v2359_v7 }
 0xe3b   :  { %1287 = vmatprep.subr.bf16.mxu0 %v2385_v29 }
 0xe3c   :  { %1135 = vmatpush1.bf16.msra.mxu1 %v2400_v34 }
 0xe3d   :  { %1136 = vmatprep.subr.bf16.mxu1 %v2403_v36 }
 0xe40   :  { %1137 = vmatpush1.bf16.msra.mxu1 %v2407_v37 }
 0xe41   :  { %1138 = vmatprep.subr.bf16.mxu1 %v2410_v38 }
 0xe44   :  { %1139 = vmatpush1.bf16.msra.mxu1 %v2413_v39 }
 0xe45   :  { %1140 = vmatprep.subr.bf16.mxu1 %v2416_v40 }
 0xe48   :  { %1141 = vmatpush1.bf16.msra.mxu1 %v2420_v41 }
 0xe49   :  { %1836 = vmatprep.subr.bf16.mxu1 %v2222_v0 }
 0xf06   :  { %v1086_v5 = vpop.f32.mrb[24].mxu1 }
 0xf07   :  { %v1092_v2 = vadd.f32 %v1086_v5, %v2377_v13  ;;  %v1826_v7 = vpop.f32.mrb[25].mxu1  ;;  %v2060_v5 = vld [vmem:[#allocation8] sm:$0xff]  }
 0xf08   :  { %v1089_v3 = vpop.f32.mrb[26].mxu1  ;;  %v1007_v6 = vpop.f32.mrb[16].mxu0 }
 0xf09   :  { %1988 = vtanh.f32 %v1092_v2  ;;  %v1827_v4 = vpop.f32.mrb[27].mxu1  ;;  %v1009_v8 = vpop.f32.mrb[17].mxu0  ;;  %v1714_v15 = vmul.f32 -1.442695, %v1092_v2  ;;  %v1008_v16 = vadd.f32 %v1007_v6, %v2451_v53 }
 0xf0a   :  { %v1010_v9 = vadd.f32 %v1009_v8, %v2453_v56  ;;  %v1011_v10 = vpop.f32.mrb[18].mxu0 }
 0xf0b   :  { %v1012_v11 = vpop.f32.mrb[19].mxu0  ;;  %v1711_v17 = vmul.f32 -1.442695, %v1008_v16 }
 0xf0c   :  { %1990 = vtanh.f32 %v1010_v9  ;;  %v1712_v28 = vmul.f32 -1.442695, %v1010_v9 }
 0xf0d   :  { %1992 = vpow2.f32 %v1714_v15 }
 0xf0e   :  { %1994 = vpow2.f32 %v1711_v17 }
 0xf13   :  { %v1989_v12 = vpop.eup %1988 }
 0xf14   :  { %1102 = vrot.lane.b32.xlu0 %v1989_v12, %s2225_s25 }
 0xf16   :  { %v1991_v14 = vpop.eup %1990 }
 0xf17   :  { %1029 = vrot.lane.b32.xlu1 %v1991_v14, %s2214_s15  ;;  %v1993_v18 = vpop.eup %1992 }
 0xf18   :  { %v1096_v19 = vadd.f32 1.0, %v1993_v18  ;;  %v1995_v20 = vpop.eup %1994 }
 0xf19   :  { %v1020_v21 = vadd.f32 1.0, %v1995_v20 }
 0xf1a   :  { %1996 = vrcp.f32 %v1096_v19 }
 0xf1b   :  { %1998 = vrcp.f32 %v1020_v21 }
 0xf24   :  { %v1997_v22 = vpop.eup %1996 }
 0xf25   :  { %v1999_v26 = vpop.eup %1998  ;;  %v1100_v45 = vmul.f32 %v1997_v22, %v2591_v47 }
 0xf26   :  { %v1027_v49 = vmul.f32 %v1999_v26, %v2595_v35 }
 0xf86   :  { %v1103_v23 = vpop.permute.xlu0 %1102 }
 0xf87   :  { %v1105_v25 = vmul.f32 %v1997_v22, %v1103_v23 }
 0xf89   :  { %1107 = vrot.lane.b32.xlu0 %v1105_v25, %s2225_s25  ;;  %v1030_v42 = vpop.permute.xlu1 %1029 }
 0xf8a   :  { %v1032_v43 = vmul.f32 %v1999_v26, %v1030_v42 }
 0xf8c   :  { %1034 = vrot.lane.b32.xlu1 %v1032_v43, %s2214_s15 }
 0xffb   :  { %v1108_v46 = vpop.permute.xlu0 %1107 }
 0xffc   :  { %v2634_v48 = vadd.f32 %v1108_v46, %v1100_v45  ;;  %v1896_v45 = vld [vmem:[#allocation11] sm:$0xff]  }
 0xffe   :  { %2000 = vtanh.f32 %v2634_v48  ;;  %v1035_v27 = vpop.permute.xlu1 %1034 }
 0xfff   :  { %v2638_v50 = vadd.f32 %v1035_v27, %v1027_v49 }
0x1001   :  { %2002 = vtanh.f32 %v2638_v50 }
0x1002   :  { %2004 = vpow2.f32 %v1712_v28 }
0x1008   :  { %v2001_v51 = vpop.eup %2000 }
0x1009   :  { %1113 = vrot.lane.b32.xlu0 %v2001_v51, %s2225_s25 }
0x100b   :  { %v2003_v44 = vpop.eup %2002 }
0x100c   :  { %1040 = vrot.lane.b32.xlu1 %v2003_v44, %s2214_s15  ;;  %v2005_v47 = vpop.eup %2004 }
0x100d   :  { %v1021_v52 = vadd.f32 1.0, %v2005_v47 }
0x100f   :  { %2006 = vrcp.f32 %v1021_v52  ;;  %v1517_v52 = vld [vmem:[#allocation2 + $0x8] sm:$0xff] }
0x1019   :  { %v2007_v35 = vpop.eup %2006 }
0x107b   :  { %v1114_v54 = vpop.permute.xlu0 %1113 }
0x107c   :  { %v1116_v24 = vmul.f32 %v1997_v22, %v1114_v54 }
0x107e   :  { %1118 = vrot.lane.b32.xlu1 %v1116_v24, %s2214_s15  ;;  %v1041_v55 = vpop.permute.xlu1 %1040  ;;  %v1202_v57 = vpack.c.bf16 %v1116_v24, %v1116_v24  ;;  %v2062_v24 = vld [vmem:[#allocation9] ss:$8 sps:$4 sm:$0xff]  }
0x107f   :  { %v1043_v58 = vmul.f32 %v2007_v35, %v1041_v55  ;;  %v1516_v55 = vld [vmem:[#allocation2] sm:$0xff] }
0x1081   :  { %1044 = vst.msk [vmem:[#allocation2 + $0x20] sm:$0xff] %vm415_vm3, %v1043_v58  ;;  %1122 = vrot.lane.b32.xlu0 %v1043_v58, %s2225_s25  ;;  %v2063_v58 = vld [vmem:[#allocation9 + $0x14] ss:$8 sps:$4 sm:$0xff]  }
0x1082   :  { %1204 = vrot.lane.b32.xlu1 %v1202_v57, %s2214_s15  ;;  %v1897_v57 = vld [vmem:[#allocation11 + $0x8] sm:$0xff]  }
0x10f0   :  { %v1119_v59 = vpop.permute.xlu1 %1118 }
0x10f3   :  { %v1123_v61 = vpop.permute.xlu0 %1122 }
0x10f4   :  { %v1205_v60 = vpop.permute.xlu1 %1204  ;;  %v1125_v62 = vsel %vm122_vm1, %v1119_v59, %v1123_v61  ;;  %v1524_v59 = vpack.c.bf16 %v1517_v52, %v1516_v55  ;;  %v2064_v61 = vld [vmem:[#allocation9 + $0x10] ss:$8 sps:$4 sm:$0xff]  }
0x10f5   :  { %1833 = vmatmul.mubr.msk.bf16.vlgmr.msra.gmra.mrb[20].mxu0 %vm122_vm1, %v1205_v60  ;;  %v1126_v63 = vpack.c.bf16 %v1125_v62, %v1125_v62  ;;  %v1898_v60 = vld [vmem:[#allocation11 + $0x10] sm:$0xff]   ;;  %v2065_v62 = vld [vmem:[#allocation9 + $0x24] ss:$8 sps:$4 sm:$0xff]  }
0x10f6   :  { %1288 = vmatpush1.bf16.msra.mxu0 %v2387_v30  ;;  %1319 = vmatprep.mubr.bf16.mxu0 %v2224_v1  ;;  %v2061_v30 = vld [vmem:[#allocation8 + $0x8] sm:$0xff]  }
0x10f7   :  { %1289 = vmatprep.subr.bf16.mxu0 %v2389_v31  ;;  %1715 = vmatmul.mubr.msk.bf16.vlgmr.msra.gmra.mrb[28].mxu1 %vm340_vm2, %v1126_v63  ;;  %v2066_v63 = vld [vmem:[#allocation9 + $0x20] ss:$8 sps:$4 sm:$0xff]  }
0x10f8   :  { %1837 = vmatpush3.bf16.msra.mxu1 %v2060_v5  ;;  %1840 = vmatprep.mubr.msk.bf16.mxu1 %vm2223_vm0, %v2222_v0  ;;  %v2067_v5 = vld [vmem:[#allocation9 + $0x34] ss:$8 sps:$4 sm:$0xff]  }
0x10f9   :  { %1838 = vmatprep.subr.bf16.mxu1 %v2222_v0 }
0x10fa   :  { %1290 = vmatpush1.bf16.msra.mxu0 %v2394_v32 }
0x10fb   :  { %1291 = vmatprep.subr.bf16.mxu0 %v2397_v33 }
0x10fc   :  { %1839 = vmatpush3.bf16.msra.mxu1 %v2061_v30  ;;  %v2068_v30 = vld [vmem:[#allocation9 + $0x30] ss:$8 sps:$4 sm:$0xff]  }
0x10fd   :  { %1444 = vmatprep.subr.bf16.mxu1 %v2385_v29 }
0x10fe   :  { %1292 = vmatpush1.bf16.msra.mxu0 %v2400_v34 }
0x10ff   :  { %1293 = vmatprep.subr.bf16.mxu0 %v2403_v36 }
0x1102   :  { %1294 = vmatpush1.bf16.msra.mxu0 %v2407_v37 }
0x1103   :  { %1295 = vmatprep.subr.bf16.mxu0 %v2410_v38 }
0x1106   :  { %1296 = vmatpush1.bf16.msra.mxu0 %v2413_v39 }
0x1107   :  { %1297 = vmatprep.subr.bf16.mxu0 %v2416_v40 }
0x110a   :  { %1298 = vmatpush1.bf16.msra.mxu0 %v2420_v41 }
0x110b   :  { %1844 = vmatprep.subr.bf16.mxu0 %v1896_v45 }
0x11c8   :  { %v1243_v31 = vpop.f32.mrb[20].mxu0 }
0x11c9   :  { %v1249_v0 = vadd.f32 %v1243_v31, %v2377_v13  ;;  %v1834_v32 = vpop.f32.mrb[21].mxu0  ;;  %v1519_v31 = vld [vmem:[#allocation2 + $0x18] sm:$0xff] }
0x11ca   :  { %v1246_v33 = vpop.f32.mrb[22].mxu0  ;;  %v1164_v36 = vpop.f32.mrb[28].mxu1 }
0x11cb   :  { %2008 = vtanh.f32 %v1249_v0  ;;  %v1835_v34 = vpop.f32.mrb[23].mxu0  ;;  %v1166_v2 = vpop.f32.mrb[29].mxu1  ;;  %v1719_v40 = vmul.f32 -1.442695, %v1249_v0  ;;  %v1165_v41 = vadd.f32 %v1164_v36, %v2451_v53  ;;  %v2069_v0 = vld [vmem:[#allocation9 + $0x44] ss:$8 sps:$4 sm:$0xff]  }
0x11cc   :  { %v1167_v29 = vadd.f32 %v1166_v2, %v2453_v56  ;;  %v1168_v37 = vpop.f32.mrb[30].mxu1  ;;  %v1518_v33 = vld [vmem:[#allocation2 + $0x10] sm:$0xff]  ;;  %v1520_v36 = vld [vmem:[#allocation2 + $0x20] sm:$0xff] }
0x11cd   :  { %v1169_v7 = vpop.f32.mrb[31].mxu1  ;;  %v1716_v3 = vmul.f32 -1.442695, %v1165_v41  ;;  %v1525_v34 = vpack.c.bf16 %v1519_v31, %v1518_v33  ;;  %v2070_v2 = vld [vmem:[#allocation9 + $0x40] ss:$8 sps:$4 sm:$0xff]  }
0x11ce   :  { %2010 = vtanh.f32 %v1167_v29  ;;  %v1717_v26 = vmul.f32 -1.442695, %v1167_v29  ;;  %v2071_v37 = vld [vmem:[#allocation9 + $0x54] ss:$8 sps:$4 sm:$0xff]   ;;  %v2072_v7 = vld [vmem:[#allocation9 + $0x50] ss:$8 sps:$4 sm:$0xff]  }
0x11cf   :  { %2012 = vpow2.f32 %v1719_v40 }
0x11d0   :  { %2014 = vpow2.f32 %v1716_v3 }
0x11d5   :  { %v2009_v38 = vpop.eup %2008 }
0x11d6   :  { %1259 = vrot.lane.b32.xlu1 %v2009_v38, %s2225_s25 }
0x11d8   :  { %v2011_v39 = vpop.eup %2010 }
0x11d9   :  { %1186 = vrot.lane.b32.xlu0 %v2011_v39, %s2214_s15  ;;  %v2013_v4 = vpop.eup %2012 }
0x11da   :  { %v1253_v6 = vadd.f32 1.0, %v2013_v4  ;;  %v2015_v8 = vpop.eup %2014 }
0x11db   :  { %v1177_v9 = vadd.f32 1.0, %v2015_v8 }
0x11dc   :  { %2016 = vrcp.f32 %v1253_v6 }
0x11dd   :  { %2018 = vrcp.f32 %v1177_v9 }
0x11e6   :  { %v2017_v10 = vpop.eup %2016 }
0x11e7   :  { %v2019_v14 = vpop.eup %2018  ;;  %v1257_v17 = vmul.f32 %v2017_v10, %v2634_v48 }
0x11e8   :  { %v1184_v20 = vmul.f32 %v2019_v14, %v2638_v50 }
0x1248   :  { %v1260_v11 = vpop.permute.xlu1 %1259 }
0x1249   :  { %v1262_v12 = vmul.f32 %v2017_v10, %v1260_v11 }
0x124b   :  { %1264 = vrot.lane.b32.xlu1 %v1262_v12, %s2225_s25  ;;  %v1187_v15 = vpop.permute.xlu0 %1186 }
0x124c   :  { %v1189_v16 = vmul.f32 %v2019_v14, %v1187_v15  ;;  %v2700_v14 = vld [vmem:[%s2752_s7] ss:$0 sm:$0xff]  ;;  %s2226_s7 = smov [#allocation12]  }
0x124e   :  { %1191 = vrot.lane.b32.xlu0 %v1189_v16, %s2214_s15 }
0x12bd   :  { %v1265_v18 = vpop.permute.xlu1 %1264 }
0x12be   :  { %v2674_v19 = vadd.f32 %v1265_v18, %v1257_v17 }
0x12c0   :  { %2020 = vtanh.f32 %v2674_v19  ;;  %v1192_v21 = vpop.permute.xlu0 %1191 }
0x12c1   :  { %v2678_v22 = vadd.f32 %v1192_v21, %v1184_v20 }
0x12c3   :  { %2022 = vtanh.f32 %v2678_v22 }
0x12c4   :  { %2024 = vpow2.f32 %v1717_v26 }
0x12ca   :  { %v2021_v23 = vpop.eup %2020 }
0x12cb   :  { %1270 = vrot.lane.b32.xlu1 %v2021_v23, %s2225_s25 }
0x12cd   :  { %v2023_v25 = vpop.eup %2022 }
0x12ce   :  { %1197 = vrot.lane.b32.xlu0 %v2023_v25, %s2214_s15  ;;  %v2025_v42 = vpop.eup %2024 }
0x12cf   :  { %v1178_v43 = vadd.f32 1.0, %v2025_v42 }
0x12d1   :  { %2026 = vrcp.f32 %v1178_v43 }
0x12db   :  { %v2027_v49 = vpop.eup %2026 }
0x133d   :  { %v1271_v46 = vpop.permute.xlu1 %1270 }
0x133e   :  { %v1273_v48 = vmul.f32 %v2017_v10, %v1271_v46 }
0x1340   :  { %1275 = vrot.lane.b32.xlu0 %v1273_v48, %s2214_s15  ;;  %v1198_v27 = vpop.permute.xlu0 %1197  ;;  %v1359_v50 = vpack.c.bf16 %v1273_v48, %v1273_v48 }
0x1341   :  { %v1200_v51 = vmul.f32 %v2027_v49, %v1198_v27 }
0x1343   :  { %1201 = vst.msk [vmem:[#allocation2 + $0x28] sm:$0xff] %vm415_vm3, %v1200_v51  ;;  %1279 = vrot.lane.b32.xlu1 %v1200_v51, %s2225_s25 }
0x1344   :  { %1361 = vrot.lane.b32.xlu0 %v1359_v50, %s2214_s15 }
0x134a   :  { %v1521_v32 = vld [vmem:[#allocation2 + $0x28] sm:$0xff] }
0x134b   :  { %v1526_v29 = vpack.c.bf16 %v1521_v32, %v1520_v36 }
0x13b2   :  { %v1276_v44 = vpop.permute.xlu0 %1275 }
0x13b5   :  { %v1280_v47 = vpop.permute.xlu1 %1279 }
0x13b6   :  { %v1362_v28 = vpop.permute.xlu0 %1361  ;;  %v1282_v54 = vsel %vm122_vm1, %v1276_v44, %v1280_v47 }
0x13b7   :  { %1841 = vmatmul.mubr.msk.bf16.vlgmr.msra.gmra.mrb[32].mxu1 %vm122_vm1, %v1362_v28  ;;  %v1283_v35 = vpack.c.bf16 %v1282_v54, %v1282_v54 }
0x13b8   :  { %1445 = vmatpush1.bf16.msra.mxu1 %v2062_v24  ;;  %1476 = vmatprep.mubr.bf16.mxu1 %v2224_v1  ;;  %v1899_v1 = vld [vmem:[#allocation11 + $0x18] sm:$0xff]  }
0x13b9   :  { %1446 = vmatprep.subr.bf16.mxu1 %v2063_v58  ;;  %1720 = vmatmul.mubr.msk.bf16.vlgmr.msra.gmra.mrb[24].mxu0 %vm340_vm2, %v1283_v35 }
0x13ba   :  { %1845 = vmatpush3.bf16.msra.mxu0 %v1896_v45  ;;  %1852 = vmatprep.mubr.msk.bf16.mxu0 %vm415_vm3, %v1524_v59 }
0x13bb   :  { %1846 = vmatprep.subr.bf16.mxu0 %v1897_v57 }
0x13bc   :  { %1447 = vmatpush1.bf16.msra.mxu1 %v2064_v61 }
0x13bd   :  { %1448 = vmatprep.subr.bf16.mxu1 %v2065_v62 }
0x13be   :  { %1847 = vmatpush3.bf16.msra.mxu0 %v1897_v57 }
0x13bf   :  { %1848 = vmatprep.subr.bf16.mxu0 %v1898_v60 }
0x13c0   :  { %1449 = vmatpush1.bf16.msra.mxu1 %v2066_v63 }
0x13c1   :  { %1450 = vmatprep.subr.bf16.mxu1 %v2067_v5 }
0x13c2   :  { %1849 = vmatpush3.bf16.msra.mxu0 %v1898_v60 }
0x13c3   :  { %1850 = vmatprep.subr.bf16.mxu0 %v1899_v1 }
0x13c4   :  { %1451 = vmatpush1.bf16.msra.mxu1 %v2068_v30 }
0x13c5   :  { %1452 = vmatprep.subr.bf16.mxu1 %v2069_v0 }
0x13c6   :  { %1851 = vmatpush3.bf16.msra.mxu0 %v1899_v1 }
0x13c8   :  { %1453 = vmatpush1.bf16.msra.mxu1 %v2070_v2 }
0x13c9   :  { %1454 = vmatprep.subr.bf16.mxu1 %v2071_v37  ;;  %1853 = vmatmul.mubr.msk.bf16.vlgmr.msra.gmra.mrb[28].mxu0 %vm415_vm3, %v1525_v34 }
0x13ca   :  { %1856 = vmatprep.mubr.msk.bf16.mxu0 %vm415_vm3, %v1526_v29 }
0x13cc   :  { %1455 = vmatpush1.bf16.msra.mxu1 %v2072_v7 }
0x148a   :  { %v1400_v38 = vpop.f32.mrb[32].mxu1 }
0x148b   :  { %v1406_v39 = vadd.f32 %v1400_v38, %v2377_v13  ;;  %v1842_v40 = vpop.f32.mrb[33].mxu1 }
0x148c   :  { %v1403_v41 = vpop.f32.mrb[34].mxu1  ;;  %v1321_v4 = vpop.f32.mrb[24].mxu0 }
0x148d   :  { %2028 = vtanh.f32 %v1406_v39  ;;  %v1843_v3 = vpop.f32.mrb[35].mxu1  ;;  %v1323_v6 = vpop.f32.mrb[25].mxu0  ;;  %v1724_v25 = vmul.f32 -1.442695, %v1406_v39  ;;  %v1322_v26 = vadd.f32 %v1321_v4, %v2451_v53 }
0x148e   :  { %v1324_v8 = vadd.f32 %v1323_v6, %v2453_v56  ;;  %v1325_v9 = vpop.f32.mrb[26].mxu0 }
0x148f   :  { %v1326_v10 = vpop.f32.mrb[27].mxu0  ;;  %v1721_v42 = vmul.f32 -1.442695, %v1322_v26 }
0x1490   :  { %2030 = vtanh.f32 %v1324_v8  ;;  %v1722_v59 = vmul.f32 -1.442695, %v1324_v8 }
0x1491   :  { %2032 = vpow2.f32 %v1724_v25 }
0x1492   :  { %2034 = vpow2.f32 %v1721_v42 }
0x1497   :  { %v2029_v11 = vpop.eup %2028 }
0x1498   :  { %1416 = vrot.lane.b32.xlu0 %v2029_v11, %s2225_s25 }
0x149a   :  { %v2031_v12 = vpop.eup %2030 }
0x149b   :  { %1343 = vrot.lane.b32.xlu1 %v2031_v12, %s2214_s15  ;;  %v2033_v43 = vpop.eup %2032 }
0x149c   :  { %v1854_v13 = vpop.f32.mrb[28].mxu0  ;;  %v1410_v45 = vadd.f32 1.0, %v2033_v43  ;;  %v2035_v46 = vpop.eup %2034 }
0x149d   :  { %v1622_v15 = vadd.f32 %v1854_v13, %v2700_v14  ;;  %v1613_v16 = vpop.f32.mrb[29].mxu0  ;;  %v1334_v48 = vadd.f32 1.0, %v2035_v46 }
0x149e   :  { %v1614_v17 = vadd.f32 %v2700_v14, %v1613_v16  ;;  %v1855_v18 = vpop.f32.mrb[30].mxu0  ;;  %2036 = vrcp.f32 %v1410_v45 }
0x149f   :  { %1646 = vst [vmem:[#allocation12 + $0x10] sm:$0xff] %v1622_v15  ;;  %v1625_v20 = vadd.f32 %v1855_v18, %v2700_v14  ;;  %v1616_v21 = vpop.f32.mrb[31].mxu0  ;;  %2038 = vrcp.f32 %v1334_v48 }
0x14a0   :  { %1644 = vst [vmem:[#allocation12] sm:$0xff] %v1614_v17  ;;  %v1617_v23 = vadd.f32 %v2700_v14, %v1616_v21 }
0x14a1   :  { %1647 = vst [vmem:[#allocation12 + $0x18] sm:$0xff] %v1625_v20 }
0x14a2   :  { %1645 = vst [vmem:[#allocation12 + $0x8] sm:$0xff] %v1617_v23 }
0x14a8   :  { %v2037_v49 = vpop.eup %2036 }
0x14a9   :  { %v2039_v51 = vpop.eup %2038  ;;  %v1414_v47 = vmul.f32 %v2037_v49, %v2674_v19 }
0x14aa   :  { %v1341_v24 = vmul.f32 %v2039_v51, %v2678_v22 }
0x150a   :  { %v1417_v27 = vpop.permute.xlu0 %1416 }
0x150b   :  { %v1419_v50 = vmul.f32 %v2037_v49, %v1417_v27 }
0x150d   :  { %1421 = vrot.lane.b32.xlu0 %v1419_v50, %s2225_s25  ;;  %v1344_v44 = vpop.permute.xlu1 %1343 }
0x150e   :  { %v1346_v28 = vmul.f32 %v2039_v51, %v1344_v44 }
0x1510   :  { %1348 = vrot.lane.b32.xlu1 %v1346_v28, %s2214_s15 }
0x157f   :  { %v1422_v52 = vpop.permute.xlu0 %1421 }
0x1580   :  { %v1424_v54 = vadd.f32 %v1422_v52, %v1414_v47 }
0x1582   :  { %2040 = vtanh.f32 %v1424_v54  ;;  %v1349_v35 = vpop.permute.xlu1 %1348 }
0x1583   :  { %v1351_v55 = vadd.f32 %v1349_v35, %v1341_v24 }
0x1585   :  { %2042 = vtanh.f32 %v1351_v55 }
0x1586   :  { %2044 = vpow2.f32 %v1722_v59 }
0x158c   :  { %v2041_v57 = vpop.eup %2040 }
0x158d   :  { %1427 = vrot.lane.b32.xlu0 %v2041_v57, %s2225_s25 }
0x158f   :  { %v2043_v58 = vpop.eup %2042 }
0x1590   :  { %1354 = vrot.lane.b32.xlu1 %v2043_v58, %s2214_s15  ;;  %v2045_v60 = vpop.eup %2044 }
0x1591   :  { %v1335_v61 = vadd.f32 1.0, %v2045_v60 }
0x1593   :  { %2046 = vrcp.f32 %v1335_v61 }
0x159d   :  { %v2047_v1 = vpop.eup %2046 }
0x15ff   :  { %v1428_v19 = vpop.permute.xlu0 %1427 }
0x1600   :  { %v1430_v62 = vmul.f32 %v2037_v49, %v1428_v19 }
0x1602   :  { %1432 = vrot.lane.b32.xlu1 %v1430_v62, %s2214_s15  ;;  %v1355_v22 = vpop.permute.xlu1 %1354 }
0x1603   :  { %v1357_v63 = vmul.f32 %v2047_v1, %v1355_v22 }
0x1605   :  { %1358 = vst.msk [vmem:[#allocation2 + $0x30] sm:$0xff] %vm415_vm3, %v1357_v63  ;;  %1436 = vrot.lane.b32.xlu0 %v1357_v63, %s2225_s25 }
0x160c   :  { %v1522_v15 = vld [vmem:[#allocation2 + $0x30] sm:$0xff] }
0x1674   :  { %v1433_v5 = vpop.permute.xlu1 %1432 }
0x1677   :  { %v1437_v30 = vpop.permute.xlu0 %1436 }
0x1678   :  { %v1439_v31 = vsel %vm122_vm1, %v1433_v5, %v1437_v30 }
0x1679   :  { %v1440_v0 = vpack.c.bf16 %v1439_v31, %v1439_v31 }
0x167b   :  { %1725 = vmatmul.mubr.msk.bf16.vlgmr.msra.gmra.mrb[36].mxu1 %vm340_vm2, %v1440_v0 }
0x174e   :  { %v1478_v32 = vpop.f32.mrb[36].mxu1 }
0x174f   :  { %v1480_v33 = vpop.f32.mrb[37].mxu1  ;;  %v1479_v37 = vadd.f32 %v1478_v32, %v2451_v53 }
0x1750   :  { %v1481_v34 = vadd.f32 %v1480_v33, %v2453_v56  ;;  %v1482_v36 = vpop.f32.mrb[38].mxu1 }
0x1751   :  { %v1483_v2 = vpop.f32.mrb[39].mxu1  ;;  %v1726_v7 = vmul.f32 -1.442695, %v1479_v37 }
0x1752   :  { %2048 = vtanh.f32 %v1481_v34  ;;  %v1727_v9 = vmul.f32 -1.442695, %v1481_v34 }
0x1753   :  { %2050 = vpow2.f32 %v1726_v7 }
0x175c   :  { %v2049_v29 = vpop.eup %2048 }
0x175d   :  { %1500 = vrot.lane.b32.xlu1 %v2049_v29, %s2214_s15  ;;  %v2051_v38 = vpop.eup %2050 }
0x175e   :  { %v1491_v39 = vadd.f32 1.0, %v2051_v38 }
0x1760   :  { %2052 = vrcp.f32 %v1491_v39 }
0x176a   :  { %v2053_v40 = vpop.eup %2052 }
0x176b   :  { %v1498_v4 = vmul.f32 %v2053_v40, %v1351_v55 }
0x17cf   :  { %v1501_v41 = vpop.permute.xlu1 %1500 }
0x17d0   :  { %v1503_v3 = vmul.f32 %v2053_v40, %v1501_v41 }
0x17d2   :  { %1505 = vrot.lane.b32.xlu0 %v1503_v3, %s2214_s15 }
0x1844   :  { %v1506_v56 = vpop.permute.xlu0 %1505 }
0x1845   :  { %v1508_v6 = vadd.f32 %v1506_v56, %v1498_v4 }
0x1847   :  { %2054 = vtanh.f32 %v1508_v6 }
0x1848   :  { %2056 = vpow2.f32 %v1727_v9 }
0x1851   :  { %v2055_v8 = vpop.eup %2054 }
0x1852   :  { %1511 = vrot.lane.b32.xlu1 %v2055_v8, %s2214_s15  ;;  %v2057_v53 = vpop.eup %2056  ;;  %s1657_s15 = sshll.u32 %s2226_s7, 4  ;;  %s1658_s15 = int_to_ptr.vmem [resolvable:$true] %s1657_s15 }
0x1853   :  { %v1492_v10 = vadd.f32 1.0, %v2057_v53  ;;  %s2183_s29 = scalar_lea.vmem %s1658_s15, 1024  ;;  %p2188_p13 = scmp.lt.s32.totalorder %s1658_s15, %s1658_s15 }
0x1854   :  { %p2184_p12 = scmp.ne.s32.totalorder %s1658_s15, %s2183_s29  ;;  %p2189_p0 = scmp.lt.s32.totalorder %s2183_s29, %s2183_s29 }
0x1855   :  { %2058 = vrcp.f32 %v1492_v10 }
0x1856   :  { %p2190_p1 = por %p2189_p0, %p2188_p13 }
0x1858   :  { %p2191_p2 = pnand %p2190_p1, %p2184_p12 }
0x185f   :  { %v2059_v11 = vpop.eup %2058 }
0x18c4   :  { %v1512_v12 = vpop.permute.xlu1 %1511 }
0x18c5   :  { %v1514_v13 = vmul.f32 %v2059_v11, %v1512_v12 }
0x18c7   :  { %1515 = vst.msk [vmem:[#allocation2 + $0x38] sm:$0xff] %vm415_vm3, %v1514_v13 }
0x18ce   :  { %v1523_v16 = vld [vmem:[#allocation2 + $0x38] sm:$0xff] }
0x18cf   :  { %v1527_v17 = vpack.c.bf16 %v1523_v16, %v1522_v15 }
0x18d1   :  { %1857 = vmatmul.mubr.msk.bf16.gmra.mrb[32].mxu0 %vm415_vm3, %v1527_v17 }
0x19a4   :  { %v1858_v18 = vpop.f32.mrb[32].mxu0 }
0x19a5   :  { %v1638_v20 = vadd.f32 %v1858_v18, %v2700_v14  ;;  %v1629_v21 = vpop.f32.mrb[33].mxu0 }
0x19a6   :  { %v1630_v23 = vadd.f32 %v2700_v14, %v1629_v21  ;;  %v1859_v25 = vpop.f32.mrb[34].mxu0 }
0x19a7   :  { %1650 = vst [vmem:[#allocation12 + $0x30] sm:$0xff] %v1638_v20  ;;  %v1641_v26 = vadd.f32 %v1859_v25, %v2700_v14  ;;  %v1632_v42 = vpop.f32.mrb[35].mxu0 }
0x19a8   :  { %1648 = vst [vmem:[#allocation12 + $0x20] sm:$0xff] %v1630_v23  ;;  %v1633_v43 = vadd.f32 %v2700_v14, %v1632_v42 }
0x19a9   :  { %1651 = vst [vmem:[#allocation12 + $0x38] sm:$0xff] %v1641_v26 }
0x19aa   :  { %1649 = vst [vmem:[#allocation12 + $0x28] sm:$0xff] %v1633_v43 }
0x19ab   :  { %2194 = shalt.err (!%p2191_p2)
}
0x19ac   :  { %s2195_s10 = scalar_lea.hbm %s2753_s8, 1024 }
0x19ad   :  { %p2196_p3 = scmp.ne.s32.totalorder %s2753_s8, %s2195_s10  ;;  %p2199_p4 = scmp.lt.u32.totalorder %s2195_s10, %s2753_s8 }
0x19af   :  { %p2201_p5 = pnand %p2199_p4, %p2196_p3 }
0x19b1   :  { %2204 = shalt.err (!%p2201_p5)
}
0x19b2   :  { %1663 = dma.vmem_to_hbm [thread:$0]  %s1658_s15, 1024, %s2753_s8, [#allocation5], %s2217_s1, %s2217_s1, %s2218_s28  }
0x19b3   :  { %2211 = dma.done.wait [#allocation5], 1024  }
0x19b4   :  { %2212 = vsyncadd [#allocation5], 4294966272 }
0x19b5   :  { %1667 = vsyncpa [#allocation4], 1 }
0x19b6   :  { %1668 = vsyncpa [#allocation7], 1 }
0x19b7   :  { %1669 = vsyncpa [#allocation10], 1 }
0x19b8   :  { %1670 = vsyncpa [#allocation5], 1 }

</bundles_post_ra>
